<compile_context>
chip_gen: v7x
topology: tpu7x:2x2x1
jax: 0.10.0
libtpu: 0.0.40
codegen_flags: <defaults>
</compile_context>

<pallas_src>
import functools
import math

import jax
import jax.numpy as jnp
from jax import lax
from jax.experimental import pallas as pl
from jax.experimental.pallas import tpu as pltpu

WIDTH = 128
IN_DIM = 28 * 28        # 784
IN_DIM_PAD = 896        # 7 * 128 (lane-aligned K for the first matmul)
OUT_DIM = 10
OUT_DIM_PAD = 128       # lane-dense output tile; slice [:, :10] in the wrapper
N_HIDDEN = 7            # number of width->width hidden Linear+Mish layers
SUBLANE = 8             # f32 sublane multiple for batch padding


def _mish(y):
    # Mish(y) = y * tanh(softplus(y)); numerically-stable softplus.
    sp = jnp.maximum(y, 0.0) + jnp.log(1.0 + jnp.exp(-jnp.abs(y)))
    return y * jnp.tanh(sp)


# ---------------------------------------------------------------------------
# Fused MLP kernel: all weights resident in VMEM, activation stays on-chip.
# ---------------------------------------------------------------------------
def _mlp_kernel(x_ref, w1_ref, wh_ref, bh_ref, wo_ref, bo_ref, o_ref):
    # x_ref:  [Bp, 896]      w1_ref: [896, 128]
    # wh_ref: [7, 128, 128]  bh_ref: [8, 128]   (bias of layer 0 + 7 hidden)
    # wo_ref: [128, 128]     bo_ref: [1, 128]   (zero-padded past column 10)
    # o_ref:  [Bp, 128]

    # Layer 0: Linear(784->128) + Mish (K padded to 896 with zero rows in w1).
    h = jnp.dot(x_ref[...], w1_ref[...], preferred_element_type=jnp.float32)
    h = _mish(h + bh_ref[pl.ds(0, 1), :])

    # 7 identical hidden layers, fully unrolled, weights indexed from VMEM.
    def body(i, h):
        y = jnp.dot(h, wh_ref[i], preferred_element_type=jnp.float32)
        y = y + bh_ref[pl.ds(i + 1, 1), :]
        return _mish(y)

    h = lax.fori_loop(0, N_HIDDEN, body, h, unroll=True)

    # Final Linear(128->10), computed into a lane-dense 128-wide padded tile.
    y = jnp.dot(h, wo_ref[...], preferred_element_type=jnp.float32)
    o_ref[...] = (y + bo_ref[...]).astype(o_ref.dtype)


def mlp_pallas(x_flat, packed):
    """x_flat: [B, 784] f32; packed: (w1_p, wh, bh, wo_p, bo_p)."""
    w1_p, wh, bh, wo_p, bo_p = packed
    B = x_flat.shape[0]
    Bp = max(SUBLANE, ((B + SUBLANE - 1) // SUBLANE) * SUBLANE)

    # Zero-pad batch rows and K columns (padding never leaks: rows are
    # independent and padded w1 rows / wo columns are zero).
    x_p = jnp.zeros((Bp, IN_DIM_PAD), jnp.float32)
    x_p = x_p.at[:B, :IN_DIM].set(x_flat.astype(jnp.float32))

    flops = 2 * Bp * (IN_DIM_PAD * WIDTH
                      + N_HIDDEN * WIDTH * WIDTH
                      + WIDTH * OUT_DIM_PAD)
    transcendentals = 3 * Bp * WIDTH * (1 + N_HIDDEN)   # exp, tanh, log per elem
    bytes_accessed = 4 * (x_p.size + w1_p.size + wh.size + bh.size
                          + wo_p.size + bo_p.size + Bp * OUT_DIM_PAD)

    out = pl.pallas_call(
        _mlp_kernel,
        out_shape=jax.ShapeDtypeStruct((Bp, OUT_DIM_PAD), jnp.float32),
        grid=(1,),
        in_specs=[
            pl.BlockSpec((Bp, IN_DIM_PAD), lambda i: (0, 0)),
            pl.BlockSpec((IN_DIM_PAD, WIDTH), lambda i: (0, 0)),
            pl.BlockSpec((N_HIDDEN, WIDTH, WIDTH), lambda i: (0, 0, 0)),
            pl.BlockSpec((1 + N_HIDDEN, WIDTH), lambda i: (0, 0)),
            pl.BlockSpec((WIDTH, OUT_DIM_PAD), lambda i: (0, 0)),
            pl.BlockSpec((1, OUT_DIM_PAD), lambda i: (0, 0)),
        ],
        out_specs=pl.BlockSpec((Bp, OUT_DIM_PAD), lambda i: (0, 0)),
        compiler_params=pltpu.CompilerParams(
            dimension_semantics=("arbitrary",),
        ),
        cost_estimate=pl.CostEstimate(
            flops=flops,
            transcendentals=transcendentals,
            bytes_accessed=bytes_accessed,
        ),
    )(x_p, w1_p, wh, bh, wo_p, bo_p)

    return out[:B, :OUT_DIM]


# ---------------------------------------------------------------------------
# Parameter init (mimics PyTorch nn.Linear default:
# U(-1/sqrt(fan_in), 1/sqrt(fan_in)) for weight and bias), then packing into
# the padded / stacked tensors consumed by the fused kernel.
# ---------------------------------------------------------------------------
def init_params(key):
    dims = [IN_DIM] + [WIDTH] * 8 + [OUT_DIM]   # 9 Linear layers
    params = []
    for i in range(len(dims) - 1):
        fan_in, fan_out = dims[i], dims[i + 1]
        key, kw, kb = jax.random.split(key, 3)
        bound = 1.0 / math.sqrt(fan_in)
        # stored as [in, out] so the kernel computes x @ w directly
        w = jax.random.uniform(kw, (fan_in, fan_out), jnp.float32, -bound, bound)
        b = jax.random.uniform(kb, (fan_out,), jnp.float32, -bound, bound)
        params.append((w, b))
    return params


def pack_params(params):
    w1, b1 = params[0]
    w1_p = jnp.zeros((IN_DIM_PAD, WIDTH), jnp.float32).at[:IN_DIM, :].set(w1)
    wh = jnp.stack([params[i][0] for i in range(1, 1 + N_HIDDEN)], axis=0)
    bh = jnp.stack([b1] + [params[i][1] for i in range(1, 1 + N_HIDDEN)], axis=0)
    w_out, b_out = params[-1]
    wo_p = jnp.zeros((WIDTH, OUT_DIM_PAD), jnp.float32).at[:, :OUT_DIM].set(w_out)
    bo_p = jnp.zeros((1, OUT_DIM_PAD), jnp.float32).at[0, :OUT_DIM].set(b_out)
    return (w1_p, wh, bh, wo_p, bo_p)


# ---------------------------------------------------------------------------
# Forward pass: Flatten -> 8x (Linear + Mish) -> Linear   (one fused kernel)
# ---------------------------------------------------------------------------
@jax.jit
def simple_mlp_mish_forward(packed, x):
    B = x.shape[0]
    x_flat = x.reshape(B, -1).astype(jnp.float32)   # Flatten (NCHW -> [B, 784])
    return mlp_pallas(x_flat, packed)


def _reference_forward(params, x):
    """Pure-JAX reference for correctness checking."""
    B = x.shape[0]
    h = x.reshape(B, -1).astype(jnp.float32)
    for i, (w, b) in enumerate(params):
        h = h @ w + b
        if i < len(params) - 1:
            h = _mish(h)
    return h


if __name__ == "__main__":
    key = jax.random.PRNGKey(0)
    k_params, k_x = jax.random.split(key)

    params = init_params(k_params)
    packed = pack_params(params)

    # small batch, MNIST-shaped NCHW input
    x = jax.random.normal(k_x, (2, 1, 28, 28), dtype=jnp.float32)

    out = simple_mlp_mish_forward(packed, x)
    out = jax.block_until_ready(out)
    assert out.shape == (2, 10), out.shape

    ref = _reference_forward(params, x)
    assert jnp.allclose(out, ref, rtol=1e-2, atol=1e-2), (out, ref)

    print("KERNEL_OK")
</pallas_src>

<mosaic_0001>
module attributes {stable_mosaic.version = 11 : i64} {
  func.func @_mlp_kernel(%arg0: i32, %arg1: memref<8x896xf32, #tpu.memory_space<vmem>>, %arg2: memref<896x128xf32, #tpu.memory_space<vmem>>, %arg3: memref<7x128x128xf32, #tpu.memory_space<vmem>>, %arg4: memref<8x128xf32, #tpu.memory_space<vmem>>, %arg5: memref<128x128xf32, #tpu.memory_space<vmem>>, %arg6: memref<1x128xf32, #tpu.memory_space<vmem>>, %arg7: memref<8x128xf32, #tpu.memory_space<vmem>>) attributes {dimension_semantics = [#tpu.dimension_semantics<arbitrary>], iteration_bounds = array<i64: 1>, scalar_prefetch = 0 : i64, scratch_operands = 0 : i64, tpu.core_type = #tpu.core_type<tc>, window_params = [{pipeline_mode = #tpu.pipeline_mode<synchronous>, transform_indices = @transform_0, window_bounds = array<i64: 8, 896>}, {pipeline_mode = #tpu.pipeline_mode<synchronous>, transform_indices = @transform_1, window_bounds = array<i64: 896, 128>}, {pipeline_mode = #tpu.pipeline_mode<synchronous>, transform_indices = @transform_2, window_bounds = array<i64: 7, 128, 128>}, {pipeline_mode = #tpu.pipeline_mode<synchronous>, transform_indices = @transform_3, window_bounds = array<i64: 8, 128>}, {pipeline_mode = #tpu.pipeline_mode<synchronous>, transform_indices = @transform_4, window_bounds = array<i64: 128, 128>}, {pipeline_mode = #tpu.pipeline_mode<synchronous>, transform_indices = @transform_5, window_bounds = array<i64: 1, 128>}, {pipeline_mode = #tpu.pipeline_mode<synchronous>, transform_indices = @transform_6, window_bounds = array<i64: 8, 128>}]} {
    %c0 = arith.constant 0 : index
    %c0_0 = arith.constant 0 : index
    %0 = vector.load %arg1[%c0, %c0_0] : memref<8x896xf32, #tpu.memory_space<vmem>>, vector<8x896xf32>
    %c0_1 = arith.constant 0 : index
    %c0_2 = arith.constant 0 : index
    %1 = vector.load %arg2[%c0_1, %c0_2] : memref<896x128xf32, #tpu.memory_space<vmem>>, vector<896x128xf32>
    %cst = arith.constant dense<0.000000e+00> : vector<8x128xf32>
    %2 = tpu.matmul %0, %1, %cst {dimension_numbers = #tpu.dot_dimension_numbers<[1], [0], [0], [1], [0, 0, 1, 1], [], []>} : vector<8x896xf32>, vector<896x128xf32>, vector<8x128xf32> -> vector<8x128xf32>
    %c0_3 = arith.constant 0 : index
    %c0_4 = arith.constant 0 : index
    %3 = vector.load %arg4[%c0_3, %c0_4] : memref<8x128xf32, #tpu.memory_space<vmem>>, vector<1x128xf32>
    %4 = vector.broadcast %3 : vector<1x128xf32> to vector<8x128xf32>
    %5 = arith.addf %2, %4 : vector<8x128xf32>
    %cst_5 = arith.constant 0.000000e+00 : f32
    %6 = vector.broadcast %cst_5 : f32 to vector<8x128xf32>
    %7 = arith.maximumf %5, %6 : vector<8x128xf32>
    %8 = math.absf %5 : vector<8x128xf32>
    %cst_6 = arith.constant 0.000000e+00 : f32
    %9 = vector.broadcast %cst_6 : f32 to vector<8x128xf32>
    %10 = arith.subf %9, %8 : vector<8x128xf32>
    %11 = math.exp %10 : vector<8x128xf32>
    %cst_7 = arith.constant 1.000000e+00 : f32
    %12 = vector.broadcast %cst_7 : f32 to vector<8x128xf32>
    %13 = arith.addf %12, %11 : vector<8x128xf32>
    %14 = math.log %13 : vector<8x128xf32>
    %15 = arith.addf %7, %14 : vector<8x128xf32>
    %16 = math.tanh %15 : vector<8x128xf32>
    %17 = arith.mulf %5, %16 : vector<8x128xf32>
    %c0_i32 = arith.constant 0 : i32
    %18 = arith.index_cast %c0_i32 : i32 to index
    %c0_8 = arith.constant 0 : index
    %c0_9 = arith.constant 0 : index
    %19 = vector.load %arg3[%18, %c0_8, %c0_9] : memref<7x128x128xf32, #tpu.memory_space<vmem>>, vector<1x128x128xf32>
    %20 = vector.shape_cast %19 : vector<1x128x128xf32> to vector<128x128xf32>
    %cst_10 = arith.constant dense<0.000000e+00> : vector<8x128xf32>
    %21 = tpu.matmul %17, %20, %cst_10 {dimension_numbers = #tpu.dot_dimension_numbers<[1], [0], [0], [1], [0, 0, 1, 1], [], []>} : vector<8x128xf32>, vector<128x128xf32>, vector<8x128xf32> -> vector<8x128xf32>
    %c1_i32 = arith.constant 1 : i32
    %22 = arith.addi %c0_i32, %c1_i32 : i32
    %23 = arith.index_cast %22 : i32 to index
    %c0_11 = arith.constant 0 : index
    %24 = vector.load %arg4[%23, %c0_11] : memref<8x128xf32, #tpu.memory_space<vmem>>, vector<1x128xf32>
    %25 = vector.broadcast %24 : vector<1x128xf32> to vector<8x128xf32>
    %26 = arith.addf %21, %25 : vector<8x128xf32>
    %cst_12 = arith.constant 0.000000e+00 : f32
    %27 = vector.broadcast %cst_12 : f32 to vector<8x128xf32>
    %28 = arith.maximumf %26, %27 : vector<8x128xf32>
    %29 = math.absf %26 : vector<8x128xf32>
    %cst_13 = arith.constant 0.000000e+00 : f32
    %30 = vector.broadcast %cst_13 : f32 to vector<8x128xf32>
    %31 = arith.subf %30, %29 : vector<8x128xf32>
    %32 = math.exp %31 : vector<8x128xf32>
    %cst_14 = arith.constant 1.000000e+00 : f32
    %33 = vector.broadcast %cst_14 : f32 to vector<8x128xf32>
    %34 = arith.addf %33, %32 : vector<8x128xf32>
    %35 = math.log %34 : vector<8x128xf32>
    %36 = arith.addf %28, %35 : vector<8x128xf32>
    %37 = math.tanh %36 : vector<8x128xf32>
    %38 = arith.mulf %26, %37 : vector<8x128xf32>
    %c1_i32_15 = arith.constant 1 : i32
    %39 = arith.index_cast %c1_i32_15 : i32 to index
    %c0_16 = arith.constant 0 : index
    %c0_17 = arith.constant 0 : index
    %40 = vector.load %arg3[%39, %c0_16, %c0_17] : memref<7x128x128xf32, #tpu.memory_space<vmem>>, vector<1x128x128xf32>
    %41 = vector.shape_cast %40 : vector<1x128x128xf32> to vector<128x128xf32>
    %cst_18 = arith.constant dense<0.000000e+00> : vector<8x128xf32>
    %42 = tpu.matmul %38, %41, %cst_18 {dimension_numbers = #tpu.dot_dimension_numbers<[1], [0], [0], [1], [0, 0, 1, 1], [], []>} : vector<8x128xf32>, vector<128x128xf32>, vector<8x128xf32> -> vector<8x128xf32>
    %c1_i32_19 = arith.constant 1 : i32
    %43 = arith.addi %c1_i32_15, %c1_i32_19 : i32
    %44 = arith.index_cast %43 : i32 to index
    %c0_20 = arith.constant 0 : index
    %45 = vector.load %arg4[%44, %c0_20] : memref<8x128xf32, #tpu.memory_space<vmem>>, vector<1x128xf32>
    %46 = vector.broadcast %45 : vector<1x128xf32> to vector<8x128xf32>
    %47 = arith.addf %42, %46 : vector<8x128xf32>
    %cst_21 = arith.constant 0.000000e+00 : f32
    %48 = vector.broadcast %cst_21 : f32 to vector<8x128xf32>
    %49 = arith.maximumf %47, %48 : vector<8x128xf32>
    %50 = math.absf %47 : vector<8x128xf32>
    %cst_22 = arith.constant 0.000000e+00 : f32
    %51 = vector.broadcast %cst_22 : f32 to vector<8x128xf32>
    %52 = arith.subf %51, %50 : vector<8x128xf32>
    %53 = math.exp %52 : vector<8x128xf32>
    %cst_23 = arith.constant 1.000000e+00 : f32
    %54 = vector.broadcast %cst_23 : f32 to vector<8x128xf32>
    %55 = arith.addf %54, %53 : vector<8x128xf32>
    %56 = math.log %55 : vector<8x128xf32>
    %57 = arith.addf %49, %56 : vector<8x128xf32>
    %58 = math.tanh %57 : vector<8x128xf32>
    %59 = arith.mulf %47, %58 : vector<8x128xf32>
    %c2_i32 = arith.constant 2 : i32
    %60 = arith.index_cast %c2_i32 : i32 to index
    %c0_24 = arith.constant 0 : index
    %c0_25 = arith.constant 0 : index
    %61 = vector.load %arg3[%60, %c0_24, %c0_25] : memref<7x128x128xf32, #tpu.memory_space<vmem>>, vector<1x128x128xf32>
    %62 = vector.shape_cast %61 : vector<1x128x128xf32> to vector<128x128xf32>
    %cst_26 = arith.constant dense<0.000000e+00> : vector<8x128xf32>
    %63 = tpu.matmul %59, %62, %cst_26 {dimension_numbers = #tpu.dot_dimension_numbers<[1], [0], [0], [1], [0, 0, 1, 1], [], []>} : vector<8x128xf32>, vector<128x128xf32>, vector<8x128xf32> -> vector<8x128xf32>
    %c1_i32_27 = arith.constant 1 : i32
    %64 = arith.addi %c2_i32, %c1_i32_27 : i32
    %65 = arith.index_cast %64 : i32 to index
    %c0_28 = arith.constant 0 : index
    %66 = vector.load %arg4[%65, %c0_28] : memref<8x128xf32, #tpu.memory_space<vmem>>, vector<1x128xf32>
    %67 = vector.broadcast %66 : vector<1x128xf32> to vector<8x128xf32>
    %68 = arith.addf %63, %67 : vector<8x128xf32>
    %cst_29 = arith.constant 0.000000e+00 : f32
    %69 = vector.broadcast %cst_29 : f32 to vector<8x128xf32>
    %70 = arith.maximumf %68, %69 : vector<8x128xf32>
    %71 = math.absf %68 : vector<8x128xf32>
    %cst_30 = arith.constant 0.000000e+00 : f32
    %72 = vector.broadcast %cst_30 : f32 to vector<8x128xf32>
    %73 = arith.subf %72, %71 : vector<8x128xf32>
    %74 = math.exp %73 : vector<8x128xf32>
    %cst_31 = arith.constant 1.000000e+00 : f32
    %75 = vector.broadcast %cst_31 : f32 to vector<8x128xf32>
    %76 = arith.addf %75, %74 : vector<8x128xf32>
    %77 = math.log %76 : vector<8x128xf32>
    %78 = arith.addf %70, %77 : vector<8x128xf32>
    %79 = math.tanh %78 : vector<8x128xf32>
    %80 = arith.mulf %68, %79 : vector<8x128xf32>
    %c3_i32 = arith.constant 3 : i32
    %81 = arith.index_cast %c3_i32 : i32 to index
    %c0_32 = arith.constant 0 : index
    %c0_33 = arith.constant 0 : index
    %82 = vector.load %arg3[%81, %c0_32, %c0_33] : memref<7x128x128xf32, #tpu.memory_space<vmem>>, vector<1x128x128xf32>
    %83 = vector.shape_cast %82 : vector<1x128x128xf32> to vector<128x128xf32>
    %cst_34 = arith.constant dense<0.000000e+00> : vector<8x128xf32>
    %84 = tpu.matmul %80, %83, %cst_34 {dimension_numbers = #tpu.dot_dimension_numbers<[1], [0], [0], [1], [0, 0, 1, 1], [], []>} : vector<8x128xf32>, vector<128x128xf32>, vector<8x128xf32> -> vector<8x128xf32>
    %c1_i32_35 = arith.constant 1 : i32
    %85 = arith.addi %c3_i32, %c1_i32_35 : i32
    %86 = arith.index_cast %85 : i32 to index
    %c0_36 = arith.constant 0 : index
    %87 = vector.load %arg4[%86, %c0_36] : memref<8x128xf32, #tpu.memory_space<vmem>>, vector<1x128xf32>
    %88 = vector.broadcast %87 : vector<1x128xf32> to vector<8x128xf32>
    %89 = arith.addf %84, %88 : vector<8x128xf32>
    %cst_37 = arith.constant 0.000000e+00 : f32
    %90 = vector.broadcast %cst_37 : f32 to vector<8x128xf32>
    %91 = arith.maximumf %89, %90 : vector<8x128xf32>
    %92 = math.absf %89 : vector<8x128xf32>
    %cst_38 = arith.constant 0.000000e+00 : f32
    %93 = vector.broadcast %cst_38 : f32 to vector<8x128xf32>
    %94 = arith.subf %93, %92 : vector<8x128xf32>
    %95 = math.exp %94 : vector<8x128xf32>
    %cst_39 = arith.constant 1.000000e+00 : f32
    %96 = vector.broadcast %cst_39 : f32 to vector<8x128xf32>
    %97 = arith.addf %96, %95 : vector<8x128xf32>
    %98 = math.log %97 : vector<8x128xf32>
    %99 = arith.addf %91, %98 : vector<8x128xf32>
    %100 = math.tanh %99 : vector<8x128xf32>
    %101 = arith.mulf %89, %100 : vector<8x128xf32>
    %c4_i32 = arith.constant 4 : i32
    %102 = arith.index_cast %c4_i32 : i32 to index
    %c0_40 = arith.constant 0 : index
    %c0_41 = arith.constant 0 : index
    %103 = vector.load %arg3[%102, %c0_40, %c0_41] : memref<7x128x128xf32, #tpu.memory_space<vmem>>, vector<1x128x128xf32>
    %104 = vector.shape_cast %103 : vector<1x128x128xf32> to vector<128x128xf32>
    %cst_42 = arith.constant dense<0.000000e+00> : vector<8x128xf32>
    %105 = tpu.matmul %101, %104, %cst_42 {dimension_numbers = #tpu.dot_dimension_numbers<[1], [0], [0], [1], [0, 0, 1, 1], [], []>} : vector<8x128xf32>, vector<128x128xf32>, vector<8x128xf32> -> vector<8x128xf32>
    %c1_i32_43 = arith.constant 1 : i32
    %106 = arith.addi %c4_i32, %c1_i32_43 : i32
    %107 = arith.index_cast %106 : i32 to index
    %c0_44 = arith.constant 0 : index
    %108 = vector.load %arg4[%107, %c0_44] : memref<8x128xf32, #tpu.memory_space<vmem>>, vector<1x128xf32>
    %109 = vector.broadcast %108 : vector<1x128xf32> to vector<8x128xf32>
    %110 = arith.addf %105, %109 : vector<8x128xf32>
    %cst_45 = arith.constant 0.000000e+00 : f32
    %111 = vector.broadcast %cst_45 : f32 to vector<8x128xf32>
    %112 = arith.maximumf %110, %111 : vector<8x128xf32>
    %113 = math.absf %110 : vector<8x128xf32>
    %cst_46 = arith.constant 0.000000e+00 : f32
    %114 = vector.broadcast %cst_46 : f32 to vector<8x128xf32>
    %115 = arith.subf %114, %113 : vector<8x128xf32>
    %116 = math.exp %115 : vector<8x128xf32>
    %cst_47 = arith.constant 1.000000e+00 : f32
    %117 = vector.broadcast %cst_47 : f32 to vector<8x128xf32>
    %118 = arith.addf %117, %116 : vector<8x128xf32>
    %119 = math.log %118 : vector<8x128xf32>
    %120 = arith.addf %112, %119 : vector<8x128xf32>
    %121 = math.tanh %120 : vector<8x128xf32>
    %122 = arith.mulf %110, %121 : vector<8x128xf32>
    %c5_i32 = arith.constant 5 : i32
    %123 = arith.index_cast %c5_i32 : i32 to index
    %c0_48 = arith.constant 0 : index
    %c0_49 = arith.constant 0 : index
    %124 = vector.load %arg3[%123, %c0_48, %c0_49] : memref<7x128x128xf32, #tpu.memory_space<vmem>>, vector<1x128x128xf32>
    %125 = vector.shape_cast %124 : vector<1x128x128xf32> to vector<128x128xf32>
    %cst_50 = arith.constant dense<0.000000e+00> : vector<8x128xf32>
    %126 = tpu.matmul %122, %125, %cst_50 {dimension_numbers = #tpu.dot_dimension_numbers<[1], [0], [0], [1], [0, 0, 1, 1], [], []>} : vector<8x128xf32>, vector<128x128xf32>, vector<8x128xf32> -> vector<8x128xf32>
    %c1_i32_51 = arith.constant 1 : i32
    %127 = arith.addi %c5_i32, %c1_i32_51 : i32
    %128 = arith.index_cast %127 : i32 to index
    %c0_52 = arith.constant 0 : index
    %129 = vector.load %arg4[%128, %c0_52] : memref<8x128xf32, #tpu.memory_space<vmem>>, vector<1x128xf32>
    %130 = vector.broadcast %129 : vector<1x128xf32> to vector<8x128xf32>
    %131 = arith.addf %126, %130 : vector<8x128xf32>
    %cst_53 = arith.constant 0.000000e+00 : f32
    %132 = vector.broadcast %cst_53 : f32 to vector<8x128xf32>
    %133 = arith.maximumf %131, %132 : vector<8x128xf32>
    %134 = math.absf %131 : vector<8x128xf32>
    %cst_54 = arith.constant 0.000000e+00 : f32
    %135 = vector.broadcast %cst_54 : f32 to vector<8x128xf32>
    %136 = arith.subf %135, %134 : vector<8x128xf32>
    %137 = math.exp %136 : vector<8x128xf32>
    %cst_55 = arith.constant 1.000000e+00 : f32
    %138 = vector.broadcast %cst_55 : f32 to vector<8x128xf32>
    %139 = arith.addf %138, %137 : vector<8x128xf32>
    %140 = math.log %139 : vector<8x128xf32>
    %141 = arith.addf %133, %140 : vector<8x128xf32>
    %142 = math.tanh %141 : vector<8x128xf32>
    %143 = arith.mulf %131, %142 : vector<8x128xf32>
    %c6_i32 = arith.constant 6 : i32
    %144 = arith.index_cast %c6_i32 : i32 to index
    %c0_56 = arith.constant 0 : index
    %c0_57 = arith.constant 0 : index
    %145 = vector.load %arg3[%144, %c0_56, %c0_57] : memref<7x128x128xf32, #tpu.memory_space<vmem>>, vector<1x128x128xf32>
    %146 = vector.shape_cast %145 : vector<1x128x128xf32> to vector<128x128xf32>
    %cst_58 = arith.constant dense<0.000000e+00> : vector<8x128xf32>
    %147 = tpu.matmul %143, %146, %cst_58 {dimension_numbers = #tpu.dot_dimension_numbers<[1], [0], [0], [1], [0, 0, 1, 1], [], []>} : vector<8x128xf32>, vector<128x128xf32>, vector<8x128xf32> -> vector<8x128xf32>
    %c1_i32_59 = arith.constant 1 : i32
    %148 = arith.addi %c6_i32, %c1_i32_59 : i32
    %149 = arith.index_cast %148 : i32 to index
    %c0_60 = arith.constant 0 : index
    %150 = vector.load %arg4[%149, %c0_60] : memref<8x128xf32, #tpu.memory_space<vmem>>, vector<1x128xf32>
    %151 = vector.broadcast %150 : vector<1x128xf32> to vector<8x128xf32>
    %152 = arith.addf %147, %151 : vector<8x128xf32>
    %cst_61 = arith.constant 0.000000e+00 : f32
    %153 = vector.broadcast %cst_61 : f32 to vector<8x128xf32>
    %154 = arith.maximumf %152, %153 : vector<8x128xf32>
    %155 = math.absf %152 : vector<8x128xf32>
    %cst_62 = arith.constant 0.000000e+00 : f32
    %156 = vector.broadcast %cst_62 : f32 to vector<8x128xf32>
    %157 = arith.subf %156, %155 : vector<8x128xf32>
    %158 = math.exp %157 : vector<8x128xf32>
    %cst_63 = arith.constant 1.000000e+00 : f32
    %159 = vector.broadcast %cst_63 : f32 to vector<8x128xf32>
    %160 = arith.addf %159, %158 : vector<8x128xf32>
    %161 = math.log %160 : vector<8x128xf32>
    %162 = arith.addf %154, %161 : vector<8x128xf32>
    %163 = math.tanh %162 : vector<8x128xf32>
    %164 = arith.mulf %152, %163 : vector<8x128xf32>
    %c7_i32 = arith.constant 7 : i32
    %c0_64 = arith.constant 0 : index
    %c0_65 = arith.constant 0 : index
    %165 = vector.load %arg5[%c0_64, %c0_65] : memref<128x128xf32, #tpu.memory_space<vmem>>, vector<128x128xf32>
    %cst_66 = arith.constant dense<0.000000e+00> : vector<8x128xf32>
    %166 = tpu.matmul %164, %165, %cst_66 {dimension_numbers = #tpu.dot_dimension_numbers<[1], [0], [0], [1], [0, 0, 1, 1], [], []>} : vector<8x128xf32>, vector<128x128xf32>, vector<8x128xf32> -> vector<8x128xf32>
    %c0_67 = arith.constant 0 : index
    %c0_68 = arith.constant 0 : index
    %167 = vector.load %arg6[%c0_67, %c0_68] : memref<1x128xf32, #tpu.memory_space<vmem>>, vector<1x128xf32>
    %168 = vector.broadcast %167 : vector<1x128xf32> to vector<8x128xf32>
    %169 = arith.addf %166, %168 : vector<8x128xf32>
    %c0_69 = arith.constant 0 : index
    %c0_70 = arith.constant 0 : index
    %170 = vector.load %arg7[%c0_69, %c0_70] : memref<8x128xf32, #tpu.memory_space<vmem>>, vector<8x128xf32>
    tpu.vector_store %arg7[%c0_69, %c0_70], %169 {strides = array<i32>} : memref<8x128xf32, #tpu.memory_space<vmem>>, vector<8x128xf32>,
    return
  }
  func.func @transform_0(%arg0: i32) -> (i32, i32) {
    %c0_i32 = arith.constant 0 : i32
    %c0_i32_0 = arith.constant 0 : i32
    %c0_i32_1 = arith.constant 0 : i32
    return %c0_i32, %c0_i32_0 : i32, i32
  }
  func.func @transform_1(%arg0: i32) -> (i32, i32) {
    %c0_i32 = arith.constant 0 : i32
    %c0_i32_0 = arith.constant 0 : i32
    %c0_i32_1 = arith.constant 0 : i32
    return %c0_i32, %c0_i32_0 : i32, i32
  }
  func.func @transform_2(%arg0: i32) -> (i32, i32, i32) {
    %c0_i32 = arith.constant 0 : i32
    %c0_i32_0 = arith.constant 0 : i32
    %c0_i32_1 = arith.constant 0 : i32
    %c0_i32_2 = arith.constant 0 : i32
    return %c0_i32, %c0_i32_0, %c0_i32_1 : i32, i32, i32
  }
  func.func @transform_3(%arg0: i32) -> (i32, i32) {
    %c0_i32 = arith.constant 0 : i32
    %c0_i32_0 = arith.constant 0 : i32
    %c0_i32_1 = arith.constant 0 : i32
    return %c0_i32, %c0_i32_0 : i32, i32
  }
  func.func @transform_4(%arg0: i32) -> (i32, i32) {
    %c0_i32 = arith.constant 0 : i32
    %c0_i32_0 = arith.constant 0 : i32
    %c0_i32_1 = arith.constant 0 : i32
    return %c0_i32, %c0_i32_0 : i32, i32
  }
  func.func @transform_5(%arg0: i32) -> (i32, i32) {
    %c0_i32 = arith.constant 0 : i32
    %c0_i32_0 = arith.constant 0 : i32
    %c0_i32_1 = arith.constant 0 : i32
    return %c0_i32, %c0_i32_0 : i32, i32
  }
  func.func @transform_6(%arg0: i32) -> (i32, i32) {
    %c0_i32 = arith.constant 0 : i32
    %c0_i32_0 = arith.constant 0 : i32
    %c0_i32_1 = arith.constant 0 : i32
    return %c0_i32, %c0_i32_0 : i32, i32
  }
}

</mosaic_0001>

<bundles_post_ra>
// kernel: simple_mlp_mish_forward.1
= control target key start
LH: loop header
LB: loop body
LE: loop exit
PB: predicated region body
PF: predicated region fallthrough
CT: control target
= control target key end

     0   :  { %11 = vsyncpa [#allocation3], 0  ;;  %s2538_s0 = inlined_call_operand.vmem [shape: f32[8,896], index: 0, kind: input, shape index: {}]   ;;  %s2539_s1 = inlined_call_operand.hbm [shape: f32[896,128], index: 1, kind: input, shape index: {}]   ;;  %s2540_s2 = inlined_call_operand.hbm [shape: f32[7,128,128], index: 2, kind: input, shape index: {}]   ;;  %s2541_s3 = inlined_call_operand.vmem [shape: f32[8,128], index: 3, kind: input, shape index: {}]   ;;  %s2542_s4 = inlined_call_operand.vmem [shape: f32[128,128], index: 4, kind: input, shape index: {}]   ;;  %s2543_s5 = inlined_call_operand.vmem [shape: f32[1,128], index: 5, kind: input, shape index: {}]   ;;  %s2544_s6 = inlined_call_operand.vmem [shape: f32[8,128], index: 6, kind: output, shape index: {}]  }
   0x1   :  { %12 = vsyncpa [#allocation5], 0  ;;  %s2283_s21 = smov [#allocation2]   ;;  %s2235_s25 = scalar_lea.hbm %s2539_s1, 14336 }
   0x2   :  { %s20_s22 = sshll.u32 %s2283_s21, 4  ;;  %p2236_p0 = scmp.ne.s32.totalorder %s2539_s1, %s2235_s25  ;;  %s21_s22 = int_to_ptr.vmem [resolvable:$true] %s20_s22 }
   0x3   :  { %p2239_p1 = scmp.lt.u32.totalorder %s2235_s25, %s2539_s1 }
   0x5   :  { %p2241_p2 = pnand %p2239_p1, %p2236_p0 }
   0x7   :  { %2244 = shalt.err (!%p2241_p2)
}
   0x8   :  { %s2245_s30 = scalar_lea.vmem %s21_s22, 14336  ;;  %p2250_p4 = scmp.lt.s32.totalorder %s21_s22, %s21_s22 }
   0x9   :  { %p2246_p3 = scmp.ne.s32.totalorder %s21_s22, %s2245_s30  ;;  %p2251_p5 = scmp.lt.s32.totalorder %s2245_s30, %s2245_s30 }
   0xb   :  { %p2252_p6 = por %p2251_p5, %p2250_p4 }
   0xd   :  { %p2253_p7 = pnand %p2252_p6, %p2246_p3 }
   0xf   :  { %2256 = shalt.err (!%p2253_p7)
}
  0x10   :  { %s2284_s7 = smov 128   ;;  %s2285_s8 = smov 8  }
  0x11   :  { %26 = dma.hbm_to_vmem [thread:$0]  %s2539_s1, 14336, %s21_s22, [#allocation3], %s2284_s7, %s2284_s7, %s2285_s8  }
  0x12   :  { %s2286_s11 = smov [#allocation4]   ;;  %s2257_s15 = scalar_lea.hbm %s2540_s2, 14336 }
  0x13   :  { %s32_s12 = sshll.u32 %s2286_s11, 4  ;;  %p2258_p8 = scmp.ne.s32.totalorder %s2540_s2, %s2257_s15  ;;  %s33_s12 = int_to_ptr.vmem [resolvable:$true] %s32_s12 }
  0x14   :  { %p2261_p9 = scmp.lt.u32.totalorder %s2257_s15, %s2540_s2 }
  0x16   :  { %p2263_p10 = pnand %p2261_p9, %p2258_p8 }
  0x18   :  { %2266 = shalt.err (!%p2263_p10)
}
  0x19   :  { %s2267_s20 = scalar_lea.vmem %s33_s12, 14336  ;;  %p2272_p12 = scmp.lt.s32.totalorder %s33_s12, %s33_s12 }
  0x1a   :  { %p2268_p11 = scmp.ne.s32.totalorder %s33_s12, %s2267_s20  ;;  %p2273_p13 = scmp.lt.s32.totalorder %s2267_s20, %s2267_s20 }
  0x1c   :  { %p2274_p0 = por %p2273_p13, %p2272_p12 }
  0x1e   :  { %p2275_p1 = pnand %p2274_p0, %p2268_p11 }
  0x20   :  { %2278 = shalt.err (!%p2275_p1)
}
  0x21   :  { %38 = dma.hbm_to_vmem [thread:$0]  %s2540_s2, 14336, %s33_s12, [#allocation5], %s2284_s7, %s2284_s7, %s2285_s8  }
  0x22   :  { %2279 = dma.done.wait [#allocation3], 14336  }
  0x23   :  { %2280 = vsyncadd [#allocation3], 4294952960 }
  0x24   :  { %2281 = dma.done.wait [#allocation5], 14336  }
  0x25   :  { %2282 = vsyncadd [#allocation5], 4294952960  ;;  %v74_v0 = vld [vmem:[#allocation2 + $0x80] sm:$0xff]  ;;  %v75_v1 = vld [vmem:[#allocation2 + $0x88] sm:$0xff]  ;;  %vm2288_vm0 = vmmov 0  }
  0x26   :  { %v58_v2 = vld [vmem:[#allocation2] sm:$0xff]  ;;  %v1868_v3 = vpack.c.bf16 %v75_v1, %v74_v0  ;;  %v59_v4 = vld [vmem:[#allocation2 + $0x8] sm:$0xff]  ;;  %v76_v11 = vld [vmem:[#allocation2 + $0x90] sm:$0xff] }
  0x27   :  { %v106_v5 = vld [vmem:[#allocation2 + $0x180] sm:$0xff]  ;;  %v107_v6 = vld [vmem:[#allocation2 + $0x188] sm:$0xff]  ;;  %v1870_v7 = vpack.c.bf16 %v59_v4, %v58_v2  ;;  %v77_v13 = vld [vmem:[#allocation2 + $0x98] sm:$0xff] }
  0x28   :  { %v1900_v8 = vpack.c.bf16 %v107_v6, %v106_v5  ;;  %v90_v9 = vld [vmem:[#allocation2 + $0x100] sm:$0xff]  ;;  %v91_v10 = vld [vmem:[#allocation2 + $0x108] sm:$0xff]  ;;  %1869 = vmatprep.subr.bf16.mxu0 %v1868_v3  ;;  %v60_v14 = vld [vmem:[#allocation2 + $0x10] sm:$0xff]  ;;  %v1872_v16 = vpack.c.bf16 %v77_v13, %v76_v11 }
  0x29   :  { %v1902_v12 = vpack.c.bf16 %v91_v10, %v90_v9  ;;  %v61_v15 = vld [vmem:[#allocation2 + $0x18] sm:$0xff]  ;;  %1871 = vmatpush3.bf16.msra.mxu0 %v1870_v7  ;;  %v108_v18 = vld [vmem:[#allocation2 + $0x190] sm:$0xff]  ;;  %v78_v23 = vld [vmem:[#allocation2 + $0xa0] sm:$0xff] }
  0x2a   :  { %1901 = vmatprep.subr.bf16.mxu1 %v1900_v8  ;;  %v1874_v17 = vpack.c.bf16 %v61_v15, %v60_v14  ;;  %v109_v19 = vld [vmem:[#allocation2 + $0x198] sm:$0xff]  ;;  %v92_v20 = vld [vmem:[#allocation2 + $0x110] sm:$0xff]  ;;  %v79_v24 = vld [vmem:[#allocation2 + $0xa8] sm:$0xff]  ;;  %1873 = vmatprep.subr.bf16.mxu0 %v1872_v16 }
  0x2b   :  { %1903 = vmatpush3.bf16.msra.mxu1 %v1902_v12  ;;  %v1904_v21 = vpack.c.bf16 %v109_v19, %v108_v18  ;;  %v93_v22 = vld [vmem:[#allocation2 + $0x118] sm:$0xff]  ;;  %v1876_v26 = vpack.c.bf16 %v79_v24, %v78_v23  ;;  %v62_v27 = vld [vmem:[#allocation2 + $0x20] sm:$0xff]  ;;  %v63_v28 = vld [vmem:[#allocation2 + $0x28] sm:$0xff] }
  0x2c   :  { %v1906_v25 = vpack.c.bf16 %v93_v22, %v92_v20  ;;  %v110_v29 = vld [vmem:[#allocation2 + $0x1a0] sm:$0xff]  ;;  %v111_v30 = vld [vmem:[#allocation2 + $0x1a8] sm:$0xff]  ;;  %v1878_v33 = vpack.c.bf16 %v63_v28, %v62_v27  ;;  %v80_v35 = vld [vmem:[#allocation2 + $0xb0] sm:$0xff] }
  0x2d   :  { %1905 = vmatprep.subr.bf16.mxu1 %v1904_v21  ;;  %v94_v31 = vld [vmem:[#allocation2 + $0x120] sm:$0xff]  ;;  %v95_v32 = vld [vmem:[#allocation2 + $0x128] sm:$0xff]  ;;  %1875 = vmatpush3.bf16.msra.mxu0 %v1874_v17  ;;  %v1908_v34 = vpack.c.bf16 %v111_v30, %v110_v29  ;;  %v81_v36 = vld [vmem:[#allocation2 + $0xb8] sm:$0xff] }
  0x2e   :  { %v64_v37 = vld [vmem:[#allocation2 + $0x30] sm:$0xff]  ;;  %1877 = vmatprep.subr.bf16.mxu0 %v1876_v26  ;;  %v1910_v38 = vpack.c.bf16 %v95_v32, %v94_v31  ;;  %v1880_v39 = vpack.c.bf16 %v81_v36, %v80_v35  ;;  %v65_v40 = vld [vmem:[#allocation2 + $0x38] sm:$0xff]  ;;  %v82_v46 = vld [vmem:[#allocation2 + $0xc0] sm:$0xff] }
  0x2f   :  { %1907 = vmatpush3.bf16.msra.mxu1 %v1906_v25  ;;  %v112_v41 = vld [vmem:[#allocation2 + $0x1b0] sm:$0xff]  ;;  %v113_v42 = vld [vmem:[#allocation2 + $0x1b8] sm:$0xff]  ;;  %v83_v47 = vld [vmem:[#allocation2 + $0xc8] sm:$0xff]  ;;  %v1882_v48 = vpack.c.bf16 %v65_v40, %v64_v37 }
  0x30   :  { %1909 = vmatprep.subr.bf16.mxu1 %v1908_v34  ;;  %v1912_v43 = vpack.c.bf16 %v113_v42, %v112_v41  ;;  %v96_v44 = vld [vmem:[#allocation2 + $0x130] sm:$0xff]  ;;  %v97_v45 = vld [vmem:[#allocation2 + $0x138] sm:$0xff]  ;;  %v114_v49 = vld [vmem:[#allocation2 + $0x1c0] sm:$0xff]  ;;  %v1884_v52 = vpack.c.bf16 %v83_v47, %v82_v46 }
  0x31   :  { %1879 = vmatpush3.bf16.msra.mxu0 %v1878_v33  ;;  %v115_v50 = vld [vmem:[#allocation2 + $0x1c8] sm:$0xff]  ;;  %v1914_v51 = vpack.c.bf16 %v97_v45, %v96_v44  ;;  %v66_v53 = vld [vmem:[#allocation2 + $0x40] sm:$0xff]  ;;  %v84_v58 = vld [vmem:[#allocation2 + $0xd0] sm:$0xff] }
  0x32   :  { %1881 = vmatprep.subr.bf16.mxu0 %v1880_v39  ;;  %v67_v54 = vld [vmem:[#allocation2 + $0x48] sm:$0xff]  ;;  %v98_v55 = vld [vmem:[#allocation2 + $0x140] sm:$0xff]  ;;  %v1916_v56 = vpack.c.bf16 %v115_v50, %v114_v49  ;;  %v85_v59 = vld [vmem:[#allocation2 + $0xd8] sm:$0xff] }
  0x33   :  { %1911 = vmatpush3.bf16.msra.mxu1 %v1910_v38  ;;  %v99_v57 = vld [vmem:[#allocation2 + $0x148] sm:$0xff]  ;;  %v116_v60 = vld [vmem:[#allocation2 + $0x1d0] sm:$0xff]  ;;  %v117_v61 = vld [vmem:[#allocation2 + $0x1d8] sm:$0xff]  ;;  %v1886_v62 = vpack.c.bf16 %v67_v54, %v66_v53  ;;  %v1888_v0 = vpack.c.bf16 %v85_v59, %v84_v58 }
  0x34   :  { %1913 = vmatprep.subr.bf16.mxu1 %v1912_v43  ;;  %v1918_v63 = vpack.c.bf16 %v99_v57, %v98_v55  ;;  %v68_v1 = vld [vmem:[#allocation2 + $0x50] sm:$0xff]  ;;  %v69_v2 = vld [vmem:[#allocation2 + $0x58] sm:$0xff]  ;;  %v1920_v4 = vpack.c.bf16 %v117_v61, %v116_v60  ;;  %v86_v6 = vld [vmem:[#allocation2 + $0xe0] sm:$0xff] }
  0x35   :  { %1883 = vmatpush3.bf16.msra.mxu0 %v1882_v48  ;;  %v100_v3 = vld [vmem:[#allocation2 + $0x150] sm:$0xff]  ;;  %v101_v5 = vld [vmem:[#allocation2 + $0x158] sm:$0xff]  ;;  %v87_v7 = vld [vmem:[#allocation2 + $0xe8] sm:$0xff]  ;;  %v1890_v10 = vpack.c.bf16 %v69_v2, %v68_v1  ;;  %v2289_v1 = vmov 0.0  }
  0x36   :  { %1885 = vmatprep.subr.bf16.mxu0 %v1884_v52  ;;  %v118_v8 = vld [vmem:[#allocation2 + $0x1e0] sm:$0xff]  ;;  %v119_v9 = vld [vmem:[#allocation2 + $0x1e8] sm:$0xff]  ;;  %v1922_v13 = vpack.c.bf16 %v101_v5, %v100_v3  ;;  %v1892_v14 = vpack.c.bf16 %v87_v7, %v86_v6  ;;  %v88_v19 = vld [vmem:[#allocation2 + $0xf0] sm:$0xff] }
  0x37   :  { %1915 = vmatpush3.bf16.msra.mxu1 %v1914_v51  ;;  %v70_v11 = vld [vmem:[#allocation2 + $0x60] sm:$0xff]  ;;  %v52_v12 = vld [vmem:[%s2538_s0 + $0x8] sm:$0xff]  ;;  %v1924_v18 = vpack.c.bf16 %v119_v9, %v118_v8  ;;  %v89_v20 = vld [vmem:[#allocation2 + $0xf8] sm:$0xff]  ;;  %v2287_v51 = vmov 0.0|0.0  }
  0x38   :  { %1917 = vmatprep.subr.bf16.mxu1 %v1916_v56  ;;  %v71_v15 = vld [vmem:[#allocation2 + $0x68] sm:$0xff]  ;;  %v102_v16 = vld [vmem:[#allocation2 + $0x160] sm:$0xff]  ;;  %239 = vmatprep.mubr.f32.mxu0 %v52_v12  ;;  %v54_v21 = vld [vmem:[%s2538_s0 + $0x18] sm:$0xff]  ;;  %v1896_v26 = vpack.c.bf16 %v89_v20, %v88_v19 }
  0x39   :  { %1887 = vmatpush3.bf16.msra.mxu0 %v1886_v62  ;;  %v103_v17 = vld [vmem:[#allocation2 + $0x168] sm:$0xff]  ;;  %v120_v22 = vld [vmem:[#allocation2 + $0x1f0] sm:$0xff]  ;;  %v121_v23 = vld [vmem:[#allocation2 + $0x1f8] sm:$0xff]  ;;  %309 = vmatprep.mubr.f32.mxu1 %v54_v21  ;;  %v1894_v24 = vpack.c.bf16 %v71_v15, %v70_v11 }
  0x3a   :  { %1889 = vmatprep.subr.bf16.mxu0 %v1888_v0  ;;  %v1926_v25 = vpack.c.bf16 %v103_v17, %v102_v16  ;;  %v72_v27 = vld [vmem:[#allocation2 + $0x70] sm:$0xff]  ;;  %v73_v28 = vld [vmem:[#allocation2 + $0x78] sm:$0xff]  ;;  %v1928_v30 = vpack.c.bf16 %v121_v23, %v120_v22  ;;  %v138_v32 = vld [vmem:[#allocation2 + $0x280] sm:$0xff] }
  0x3b   :  { %1919 = vmatpush3.bf16.msra.mxu1 %v1918_v63  ;;  %v104_v29 = vld [vmem:[#allocation2 + $0x170] sm:$0xff]  ;;  %v105_v31 = vld [vmem:[#allocation2 + $0x178] sm:$0xff]  ;;  %v139_v33 = vld [vmem:[#allocation2 + $0x288] sm:$0xff]  ;;  %v1898_v34 = vpack.c.bf16 %v73_v28, %v72_v27 }
  0x3c   :  { %1921 = vmatprep.subr.bf16.mxu1 %v1920_v4  ;;  %v1930_v35 = vpack.c.bf16 %v105_v31, %v104_v29  ;;  %v1932_v36 = vpack.c.bf16 %v139_v33, %v138_v32  ;;  %v122_v37 = vld [vmem:[#allocation2 + $0x200] sm:$0xff]  ;;  %v123_v38 = vld [vmem:[#allocation2 + $0x208] sm:$0xff]  ;;  %v140_v39 = vld [vmem:[#allocation2 + $0x290] sm:$0xff] }
  0x3d   :  { %1891 = vmatpush3.bf16.msra.mxu0 %v1890_v10  ;;  %v141_v40 = vld [vmem:[#allocation2 + $0x298] sm:$0xff]  ;;  %v154_v41 = vld [vmem:[#allocation2 + $0x300] sm:$0xff]  ;;  %v155_v42 = vld [vmem:[#allocation2 + $0x308] sm:$0xff]  ;;  %v1934_v44 = vpack.c.bf16 %v123_v38, %v122_v37 }
  0x3e   :  { %1893 = vmatprep.subr.bf16.mxu0 %v1892_v14  ;;  %v51_v43 = vld [vmem:[%s2538_s0] sm:$0xff]  ;;  %v53_v45 = vld [vmem:[%s2538_s0 + $0x10] sm:$0xff]  ;;  %v1936_v46 = vpack.c.bf16 %v141_v40, %v140_v39  ;;  %v125_v48 = vld [vmem:[#allocation2 + $0x218] sm:$0xff]  ;;  %v1965_v49 = vpack.c.bf16 %v155_v42, %v154_v41 }
  0x3f   :  { %1923 = vmatpush3.bf16.msra.mxu1 %v1922_v13  ;;  %v124_v47 = vld [vmem:[#allocation2 + $0x210] sm:$0xff]  ;;  %v142_v50 = vld [vmem:[#allocation2 + $0x2a0] sm:$0xff]  ;;  %v143_v52 = vld [vmem:[#allocation2 + $0x2a8] sm:$0xff] }
  0x40   :  { %1925 = vmatprep.subr.bf16.mxu1 %v1924_v18  ;;  %v156_v53 = vld [vmem:[#allocation2 + $0x310] sm:$0xff]  ;;  %v157_v54 = vld [vmem:[#allocation2 + $0x318] sm:$0xff]  ;;  %v1938_v55 = vpack.c.bf16 %v125_v48, %v124_v47  ;;  %v126_v56 = vld [vmem:[#allocation2 + $0x220] sm:$0xff]  ;;  %v1940_v57 = vpack.c.bf16 %v143_v52, %v142_v50 }
  0x41   :  { %1895 = vmatpush3.bf16.msra.mxu0 %v1894_v24  ;;  %v127_v58 = vld [vmem:[#allocation2 + $0x228] sm:$0xff]  ;;  %v1968_v59 = vpack.c.bf16 %v157_v54, %v156_v53  ;;  %v144_v60 = vld [vmem:[#allocation2 + $0x2b0] sm:$0xff]  ;;  %v145_v61 = vld [vmem:[#allocation2 + $0x2b8] sm:$0xff] }
  0x42   :  { %1897 = vmatprep.subr.bf16.mxu0 %v1896_v26  ;;  %v158_v62 = vld [vmem:[#allocation2 + $0x320] sm:$0xff]  ;;  %v159_v63 = vld [vmem:[#allocation2 + $0x328] sm:$0xff]  ;;  %v1942_v2 = vpack.c.bf16 %v127_v58, %v126_v56  ;;  %v1944_v3 = vpack.c.bf16 %v145_v61, %v144_v60  ;;  %v128_v4 = vld [vmem:[#allocation2 + $0x230] sm:$0xff] }
  0x43   :  { %1927 = vmatpush3.bf16.msra.mxu1 %v1926_v25  ;;  %v56_v0 = vld [vmem:[%s2538_s0 + $0x28] sm:$0xff]  ;;  %v129_v5 = vld [vmem:[#allocation2 + $0x238] sm:$0xff]  ;;  %v1971_v6 = vpack.c.bf16 %v159_v63, %v158_v62  ;;  %v146_v7 = vld [vmem:[#allocation2 + $0x2c0] sm:$0xff] }
  0x44   :  { %1929 = vmatprep.subr.bf16.mxu1 %v1928_v30  ;;  %v147_v8 = vld [vmem:[#allocation2 + $0x2c8] sm:$0xff]  ;;  %v160_v9 = vld [vmem:[#allocation2 + $0x330] sm:$0xff]  ;;  %v161_v10 = vld [vmem:[#allocation2 + $0x338] sm:$0xff]  ;;  %v1946_v11 = vpack.c.bf16 %v129_v5, %v128_v4 }
  0x45   :  { %1899 = vmatpush3.bf16.msra.mxu0 %v1898_v34  ;;  %v1948_v12 = vpack.c.bf16 %v147_v8, %v146_v7  ;;  %v130_v13 = vld [vmem:[#allocation2 + $0x240] sm:$0xff]  ;;  %v131_v14 = vld [vmem:[#allocation2 + $0x248] sm:$0xff]  ;;  %v1974_v15 = vpack.c.bf16 %v161_v10, %v160_v9  ;;  %v148_v16 = vld [vmem:[#allocation2 + $0x2d0] sm:$0xff] }
  0x46   :  { %1933 = vmatprep.subr.bf16.mxu0 %v1932_v36  ;;  %v149_v17 = vld [vmem:[#allocation2 + $0x2d8] sm:$0xff]  ;;  %v162_v18 = vld [vmem:[#allocation2 + $0x340] sm:$0xff]  ;;  %v163_v19 = vld [vmem:[#allocation2 + $0x348] sm:$0xff]  ;;  %v1950_v20 = vpack.c.bf16 %v131_v14, %v130_v13 }
  0x47   :  { %1931 = vmatpush3.bf16.msra.mxu1 %v1930_v35  ;;  %v1952_v21 = vpack.c.bf16 %v149_v17, %v148_v16  ;;  %v132_v22 = vld [vmem:[#allocation2 + $0x250] sm:$0xff]  ;;  %v133_v23 = vld [vmem:[#allocation2 + $0x258] sm:$0xff]  ;;  %v1977_v24 = vpack.c.bf16 %v163_v19, %v162_v18  ;;  %v150_v25 = vld [vmem:[#allocation2 + $0x2e0] sm:$0xff] }
  0x48   :  { %1964 = vmatprep.subr.bf16.mxu1 %v2287_v51  ;;  %240 = vmatmul.mubr.f32.vlgmr.msra.gmra.mrb[0].mxu0 %v51_v43  ;;  %v151_v26 = vld [vmem:[#allocation2 + $0x2e8] sm:$0xff]  ;;  %v164_v27 = vld [vmem:[#allocation2 + $0x350] sm:$0xff]  ;;  %v165_v28 = vld [vmem:[#allocation2 + $0x358] sm:$0xff]  ;;  %v1954_v29 = vpack.c.bf16 %v133_v23, %v132_v22 }
  0x49   :  { %1935 = vmatpush3.bf16.msra.mxu0 %v1934_v44  ;;  %379 = vmatprep.mubr.f32.mxu0 %v56_v0  ;;  %v1956_v30 = vpack.c.bf16 %v151_v26, %v150_v25  ;;  %v134_v31 = vld [vmem:[#allocation2 + $0x260] sm:$0xff]  ;;  %v135_v32 = vld [vmem:[#allocation2 + $0x268] sm:$0xff]  ;;  %v1980_v33 = vpack.c.bf16 %v165_v28, %v164_v27  ;;  %v152_v34 = vld [vmem:[#allocation2 + $0x2f0] sm:$0xff] }
  0x4a   :  { %310 = vmatmul.mubr.f32.vlgmr.msra.gmra.mrb[0].mxu1 %v53_v45  ;;  %1937 = vmatprep.subr.bf16.mxu0 %v1936_v46  ;;  %v153_v35 = vld [vmem:[#allocation2 + $0x2f8] sm:$0xff]  ;;  %v166_v36 = vld [vmem:[#allocation2 + $0x360] sm:$0xff]  ;;  %v167_v37 = vld [vmem:[#allocation2 + $0x368] sm:$0xff]  ;;  %v1958_v38 = vpack.c.bf16 %v135_v32, %v134_v31 }
  0x4b   :  { %1966 = vmatpush3.bf16.msra.mxu1 %v1965_v49  ;;  %1585 = vmatprep.mubr.msk.f32.mxu1 %vm2288_vm0, %v2289_v1  ;;  %v1960_v39 = vpack.c.bf16 %v153_v35, %v152_v34  ;;  %v136_v40 = vld [vmem:[#allocation2 + $0x270] sm:$0xff]  ;;  %v137_v41 = vld [vmem:[#allocation2 + $0x278] sm:$0xff]  ;;  %v1983_v42 = vpack.c.bf16 %v167_v37, %v166_v36  ;;  %v55_v47 = vld [vmem:[%s2538_s0 + $0x20] sm:$0xff] }
  0x4c   :  { %1967 = vmatprep.subr.bf16.mxu1 %v2287_v51  ;;  %v168_v43 = vld [vmem:[#allocation2 + $0x370] sm:$0xff]  ;;  %v169_v44 = vld [vmem:[#allocation2 + $0x378] sm:$0xff]  ;;  %v1962_v45 = vpack.c.bf16 %v137_v41, %v136_v40  ;;  %v466_v49 = vld [vmem:[#allocation4] sm:$0xff] }
  0x4d   :  { %1939 = vmatpush3.bf16.msra.mxu0 %v1938_v55  ;;  %v1986_v46 = vpack.c.bf16 %v169_v44, %v168_v43  ;;  %v57_v48 = vld [vmem:[%s2538_s0 + $0x30] sm:$0xff]  ;;  %v467_v50 = vld [vmem:[#allocation4 + $0x8] sm:$0xff]  ;;  %v469_v54 = vld [vmem:[#allocation4 + $0x18] sm:$0xff] }
  0x4e   :  { %1941 = vmatprep.subr.bf16.mxu0 %v1940_v57  ;;  %v1989_v52 = vpack.c.bf16 %v467_v50, %v466_v49  ;;  %v468_v53 = vld [vmem:[#allocation4 + $0x10] sm:$0xff]  ;;  %v470_v56 = vld [vmem:[#allocation4 + $0x20] sm:$0xff]  ;;  %v471_v57 = vld [vmem:[#allocation4 + $0x28] sm:$0xff] }
  0x4f   :  { %1969 = vmatpush3.bf16.msra.mxu1 %v1968_v59  ;;  %v1992_v55 = vpack.c.bf16 %v469_v54, %v468_v53  ;;  %v1995_v58 = vpack.c.bf16 %v471_v57, %v470_v56  ;;  %v472_v59 = vld [vmem:[#allocation4 + $0x30] sm:$0xff]  ;;  %v473_v60 = vld [vmem:[#allocation4 + $0x38] sm:$0xff]  ;;  %v474_v62 = vld [vmem:[#allocation4 + $0x40] sm:$0xff] }
  0x50   :  { %1970 = vmatprep.subr.bf16.mxu1 %v2287_v51  ;;  %v1998_v61 = vpack.c.bf16 %v473_v60, %v472_v59  ;;  %v475_v63 = vld [vmem:[#allocation4 + $0x48] sm:$0xff]  ;;  %v478_v5 = vld [vmem:[#allocation4 + $0x60] sm:$0xff]  ;;  %v480_v8 = vld [vmem:[#allocation4 + $0x70] sm:$0xff] }
  0x51   :  { %1943 = vmatpush3.bf16.msra.mxu0 %v1942_v2  ;;  %v2001_v0 = vpack.c.bf16 %v475_v63, %v474_v62  ;;  %v476_v2 = vld [vmem:[#allocation4 + $0x50] sm:$0xff]  ;;  %v481_v9 = vld [vmem:[#allocation4 + $0x78] sm:$0xff]  ;;  %v573_v44 = vld [vmem:[#allocation4 + $0xa0] sm:$0xff] }
  0x52   :  { %1945 = vmatprep.subr.bf16.mxu0 %v1944_v3  ;;  %v477_v3 = vld [vmem:[#allocation4 + $0x58] sm:$0xff]  ;;  %v2010_v10 = vpack.c.bf16 %v481_v9, %v480_v8  ;;  %v571_v41 = vld [vmem:[#allocation4 + $0x90] sm:$0xff]  ;;  %v577_v50 = vld [vmem:[#allocation4 + $0xc0] sm:$0xff] }
  0x53   :  { %1972 = vmatpush3.bf16.msra.mxu1 %v1971_v6  ;;  %v2004_v4 = vpack.c.bf16 %v477_v3, %v476_v2  ;;  %v479_v6 = vld [vmem:[#allocation4 + $0x68] sm:$0xff]  ;;  %v579_v54 = vld [vmem:[#allocation4 + $0xd0] sm:$0xff]  ;;  %v581_v57 = vld [vmem:[#allocation4 + $0xe0] sm:$0xff] }
  0x54   :  { %1973 = vmatprep.subr.bf16.mxu1 %v2287_v51  ;;  %v2007_v7 = vpack.c.bf16 %v479_v6, %v478_v5  ;;  %v583_v60 = vld [vmem:[#allocation4 + $0xf0] sm:$0xff]  ;;  %v1287_v63 = vld [vmem:[%s2541_s3 + $0x1] ss:$0 sm:$0xff] }
  0x55   :  { %1947 = vmatpush3.bf16.msra.mxu0 %v1946_v11 }
  0x56   :  { %1949 = vmatprep.subr.bf16.mxu0 %v1948_v12  ;;  %v1286_v12 = vld [vmem:[%s2541_s3] ss:$0 sm:$0xff] }
  0x57   :  { %1975 = vmatpush3.bf16.msra.mxu1 %v1974_v15 }
  0x58   :  { %1976 = vmatprep.subr.bf16.mxu1 %v2287_v51 }
  0x59   :  { %1951 = vmatpush3.bf16.msra.mxu0 %v1950_v20 }
  0x5a   :  { %1953 = vmatprep.subr.bf16.mxu0 %v1952_v21 }
  0x5b   :  { %1978 = vmatpush3.bf16.msra.mxu1 %v1977_v24 }
  0x5c   :  { %1979 = vmatprep.subr.bf16.mxu1 %v2287_v51 }
  0x5d   :  { %1955 = vmatpush3.bf16.msra.mxu0 %v1954_v29 }
  0x5e   :  { %1957 = vmatprep.subr.bf16.mxu0 %v1956_v30 }
  0x5f   :  { %1981 = vmatpush3.bf16.msra.mxu1 %v1980_v33 }
  0x60   :  { %1982 = vmatprep.subr.bf16.mxu1 %v2287_v51 }
  0x61   :  { %1959 = vmatpush3.bf16.msra.mxu0 %v1958_v38  ;;  %v569_v38 = vld [vmem:[#allocation4 + $0x80] sm:$0xff] }
  0x62   :  { %1961 = vmatprep.subr.bf16.mxu0 %v1960_v39  ;;  %v570_v39 = vld [vmem:[#allocation4 + $0x88] sm:$0xff] }
  0x63   :  { %1984 = vmatpush3.bf16.msra.mxu1 %v1983_v42  ;;  %v2013_v40 = vpack.c.bf16 %v570_v39, %v569_v38  ;;  %v572_v42 = vld [vmem:[#allocation4 + $0x98] sm:$0xff]  ;;  %v1288_v39 = vld [vmem:[%s2541_s3 + $0x2] ss:$0 sm:$0xff] }
  0x64   :  { %1985 = vmatprep.subr.bf16.mxu1 %v2287_v51  ;;  %v2016_v43 = vpack.c.bf16 %v572_v42, %v571_v41 }
  0x65   :  { %1963 = vmatpush3.bf16.msra.mxu0 %v1962_v45  ;;  %v574_v45 = vld [vmem:[#allocation4 + $0xa8] sm:$0xff] }
  0x66   :  { %1988 = vmatprep.subr.bf16.mxu0 %v2287_v51 }
  0x67   :  { %1987 = vmatpush3.bf16.msra.mxu1 %v1986_v46  ;;  %v2019_v46 = vpack.c.bf16 %v574_v45, %v573_v44 }
  0x68   :  { %2012 = vmatprep.subr.bf16.mxu1 %v2287_v51  ;;  %380 = vmatmul.mubr.f32.vlgmr.msra.gmra.mrb[2].mxu0 %v55_v47  ;;  %v575_v47 = vld [vmem:[#allocation4 + $0xb0] sm:$0xff] }
  0x69   :  { %1620 = vmatprep.mubr.msk.f32.mxu0 %vm2288_vm0, %v2289_v1  ;;  %1990 = vmatpush3.bf16.msra.mxu0 %v1989_v52  ;;  %v578_v52 = vld [vmem:[#allocation4 + $0xc8] sm:$0xff] }
  0x6a   :  { %1586 = vmatmul.mubr.f32.vlgmr.msra.gmra.mrb[2].mxu1 %v57_v48  ;;  %1991 = vmatprep.subr.bf16.mxu0 %v2287_v51  ;;  %v576_v48 = vld [vmem:[#allocation4 + $0xb8] sm:$0xff]  ;;  %v2025_v53 = vpack.c.bf16 %v578_v52, %v577_v50 }
  0x6b   :  { %1655 = vmatprep.mubr.msk.f32.mxu1 %vm2288_vm0, %v2289_v1  ;;  %2014 = vmatpush3.bf16.msra.mxu1 %v2013_v40  ;;  %v2022_v49 = vpack.c.bf16 %v576_v48, %v575_v47 }
  0x6c   :  { %2015 = vmatprep.subr.bf16.mxu1 %v2287_v51 }
  0x6d   :  { %1993 = vmatpush3.bf16.msra.mxu0 %v1992_v55  ;;  %v580_v55 = vld [vmem:[#allocation4 + $0xd8] sm:$0xff] }
  0x6e   :  { %1994 = vmatprep.subr.bf16.mxu0 %v2287_v51  ;;  %v2028_v56 = vpack.c.bf16 %v580_v55, %v579_v54  ;;  %v775_v55 = vld [vmem:[#allocation4 + $0x180] sm:$0xff] }
  0x6f   :  { %2017 = vmatpush3.bf16.msra.mxu1 %v2016_v43 }
  0x70   :  { %2018 = vmatprep.subr.bf16.mxu1 %v2287_v51 }
  0x71   :  { %1996 = vmatpush3.bf16.msra.mxu0 %v1995_v58  ;;  %v582_v58 = vld [vmem:[#allocation4 + $0xe8] sm:$0xff] }
  0x72   :  { %1997 = vmatprep.subr.bf16.mxu0 %v2287_v51  ;;  %v2031_v59 = vpack.c.bf16 %v582_v58, %v581_v57  ;;  %v777_v58 = vld [vmem:[#allocation4 + $0x190] sm:$0xff] }
  0x73   :  { %2020 = vmatpush3.bf16.msra.mxu1 %v2019_v46 }
  0x74   :  { %2021 = vmatprep.subr.bf16.mxu1 %v2287_v51 }
  0x75   :  { %1999 = vmatpush3.bf16.msra.mxu0 %v1998_v61  ;;  %v584_v61 = vld [vmem:[#allocation4 + $0xf8] sm:$0xff] }
  0x76   :  { %2000 = vmatprep.subr.bf16.mxu0 %v2287_v51  ;;  %v2034_v62 = vpack.c.bf16 %v584_v61, %v583_v60  ;;  %v779_v61 = vld [vmem:[#allocation4 + $0x1a0] sm:$0xff] }
  0x77   :  { %2023 = vmatpush3.bf16.msra.mxu1 %v2022_v49 }
  0x78   :  { %2024 = vmatprep.subr.bf16.mxu1 %v2287_v51 }
  0x79   :  { %2002 = vmatpush3.bf16.msra.mxu0 %v2001_v0 }
  0x7a   :  { %2003 = vmatprep.subr.bf16.mxu0 %v2287_v51 }
  0x7b   :  { %2026 = vmatpush3.bf16.msra.mxu1 %v2025_v53 }
  0x7c   :  { %2027 = vmatprep.subr.bf16.mxu1 %v2287_v51 }
  0x7d   :  { %2005 = vmatpush3.bf16.msra.mxu0 %v2004_v4 }
  0x7e   :  { %2006 = vmatprep.subr.bf16.mxu0 %v2287_v51 }
  0x7f   :  { %2029 = vmatpush3.bf16.msra.mxu1 %v2028_v56  ;;  %v776_v56 = vld [vmem:[#allocation4 + $0x188] sm:$0xff] }
  0x80   :  { %2030 = vmatprep.subr.bf16.mxu1 %v2287_v51  ;;  %v2061_v57 = vpack.c.bf16 %v776_v56, %v775_v55  ;;  %v1290_v56 = vld [vmem:[%s2541_s3 + $0x4] ss:$0 sm:$0xff] }
  0x81   :  { %2008 = vmatpush3.bf16.msra.mxu0 %v2007_v7 }
  0x82   :  { %2009 = vmatprep.subr.bf16.mxu0 %v2287_v51 }
  0x83   :  { %2032 = vmatpush3.bf16.msra.mxu1 %v2031_v59  ;;  %v778_v59 = vld [vmem:[#allocation4 + $0x198] sm:$0xff] }
  0x84   :  { %2033 = vmatprep.subr.bf16.mxu1 %v2287_v51  ;;  %v2064_v60 = vpack.c.bf16 %v778_v59, %v777_v58 }
  0x85   :  { %2011 = vmatpush3.bf16.msra.mxu0 %v2010_v10 }
  0x86   :  { %2036 = vmatprep.subr.bf16.mxu0 %v2287_v51 }
  0x87   :  { %2035 = vmatpush3.bf16.msra.mxu1 %v2034_v62  ;;  %v780_v62 = vld [vmem:[#allocation4 + $0x1a8] sm:$0xff] }
  0x88   :  { %2060 = vmatprep.subr.bf16.mxu1 %v2287_v51 }
 0x11b   :  { %v1327_v11 = vpop.f32.mrb[0].mxu0 }
 0x11c   :  { %v1328_v13 = vpop.f32.mrb[1].mxu0 }
 0x11d   :  { %v1362_v14 = vpop.f32.mrb[0].mxu1  ;;  %v1329_v15 = vadd.f32 %v1328_v13, %v1327_v11 }
 0x11e   :  { %v1363_v16 = vpop.f32.mrb[1].mxu1 }
 0x11f   :  { %v1364_v17 = vadd.f32 %v1363_v16, %v1362_v14  ;;  %v242_v18 = vadd.f32 %v1329_v15, %v1286_v12  ;;  %v672_v15 = vld [vmem:[#allocation4 + $0x100] sm:$0xff]  ;;  %v673_v16 = vld [vmem:[#allocation4 + $0x108] sm:$0xff] }
 0x121   :  { %v312_v19 = vadd.f32 %v1364_v17, %v242_v18  ;;  %v2037_v17 = vpack.c.bf16 %v673_v16, %v672_v15  ;;  %v674_v18 = vld [vmem:[#allocation4 + $0x110] sm:$0xff]  ;;  %v1289_v16 = vld [vmem:[%s2541_s3 + $0x3] ss:$0 sm:$0xff] }
 0x13b   :  { %v1397_v20 = vpop.f32.mrb[2].mxu0 }
 0x13c   :  { %v1398_v21 = vpop.f32.mrb[3].mxu0 }
 0x13d   :  { %v451_v22 = vpop.f32.mrb[2].mxu1  ;;  %v1399_v23 = vadd.f32 %v1398_v21, %v1397_v20  ;;  %v676_v21 = vld [vmem:[#allocation4 + $0x120] sm:$0xff] }
 0x13e   :  { %v1587_v24 = vpop.f32.mrb[3].mxu1 }
 0x13f   :  { %v382_v25 = vadd.f32 %v1399_v23, %v312_v19  ;;  %v675_v19 = vld [vmem:[#allocation4 + $0x118] sm:$0xff]  ;;  %v678_v24 = vld [vmem:[#allocation4 + $0x130] sm:$0xff] }
 0x140   :  { %v2040_v20 = vpack.c.bf16 %v675_v19, %v674_v18 }
 0x141   :  { %v452_v26 = vadd.f32 %v451_v22, %v382_v25  ;;  %v677_v22 = vld [vmem:[#allocation4 + $0x128] sm:$0xff]  ;;  %v679_v25 = vld [vmem:[#allocation4 + $0x138] sm:$0xff] }
 0x142   :  { %v2043_v23 = vpack.c.bf16 %v677_v22, %v676_v21 }
 0x143   :  { %v456_v27 = vand.u32 2147483647, %v452_v26  ;;  %v455_v33 = vmax.f32 %v452_v26, 0.0 }
 0x145   :  { %v457_v28 = vsub.f32 0.0, %v456_v27  ;;  %v680_v27 = vld [vmem:[#allocation4 + $0x140] sm:$0xff] }
 0x147   :  { %v458_v29 = vmul.f32 1.442695, %v457_v28  ;;  %v681_v28 = vld [vmem:[#allocation4 + $0x148] sm:$0xff] }
 0x149   :  { %2187 = vpow2.f32 %v458_v29  ;;  %v2049_v29 = vpack.c.bf16 %v681_v28, %v680_v27 }
 0x153   :  { %v2188_v30 = vpop.eup %2187 }
 0x154   :  { %v460_v31 = vadd.f32 1.0, %v2188_v30  ;;  %v682_v30 = vld [vmem:[#allocation4 + $0x150] sm:$0xff] }
 0x156   :  { %2189 = vlog2.f32 %v460_v31  ;;  %v683_v31 = vld [vmem:[#allocation4 + $0x158] sm:$0xff] }
 0x160   :  { %v2190_v32 = vpop.eup %2189 }
 0x161   :  { %v462_v34 = vmul.f32 0.6931472, %v2190_v32  ;;  %v2052_v32 = vpack.c.bf16 %v683_v31, %v682_v30  ;;  %v878_v31 = vld [vmem:[#allocation4 + $0x200] sm:$0xff] }
 0x163   :  { %v463_v35 = vadd.f32 %v462_v34, %v455_v33  ;;  %v684_v33 = vld [vmem:[#allocation4 + $0x160] sm:$0xff]  ;;  %v685_v34 = vld [vmem:[#allocation4 + $0x168] sm:$0xff] }
 0x165   :  { %2191 = vtanh.f32 %v463_v35  ;;  %v2055_v35 = vpack.c.bf16 %v685_v34, %v684_v33  ;;  %v880_v34 = vld [vmem:[#allocation4 + $0x210] sm:$0xff] }
 0x16f   :  { %v2192_v36 = vpop.eup %2191 }
 0x170   :  { %v465_v37 = vmul.f32 %v2192_v36, %v452_v26  ;;  %v2046_v26 = vpack.c.bf16 %v679_v25, %v678_v24  ;;  %v686_v36 = vld [vmem:[#allocation4 + $0x170] sm:$0xff] }
 0x172   :  { %1621 = vmatmul.mubr.f32.vlgmr.msra.gmra.mrb[4].mxu0 %v465_v37  ;;  %v687_v37 = vld [vmem:[#allocation4 + $0x178] sm:$0xff] }
 0x173   :  { %1690 = vmatprep.mubr.msk.f32.mxu0 %vm2288_vm0, %v2289_v1  ;;  %2038 = vmatpush3.bf16.msra.mxu0 %v2037_v17  ;;  %v2058_v38 = vpack.c.bf16 %v687_v37, %v686_v36  ;;  %v882_v37 = vld [vmem:[#allocation4 + $0x220] sm:$0xff] }
 0x174   :  { %2039 = vmatprep.subr.bf16.mxu0 %v2287_v51 }
 0x177   :  { %2041 = vmatpush3.bf16.msra.mxu0 %v2040_v20 }
 0x178   :  { %2042 = vmatprep.subr.bf16.mxu0 %v2287_v51 }
 0x17b   :  { %2044 = vmatpush3.bf16.msra.mxu0 %v2043_v23 }
 0x17c   :  { %2045 = vmatprep.subr.bf16.mxu0 %v2287_v51 }
 0x17f   :  { %2047 = vmatpush3.bf16.msra.mxu0 %v2046_v26 }
 0x180   :  { %2048 = vmatprep.subr.bf16.mxu0 %v2287_v51 }
 0x183   :  { %2050 = vmatpush3.bf16.msra.mxu0 %v2049_v29 }
 0x184   :  { %2051 = vmatprep.subr.bf16.mxu0 %v2287_v51 }
 0x187   :  { %2053 = vmatpush3.bf16.msra.mxu0 %v2052_v32  ;;  %v879_v32 = vld [vmem:[#allocation4 + $0x208] sm:$0xff] }
 0x188   :  { %2054 = vmatprep.subr.bf16.mxu0 %v2287_v51  ;;  %v2085_v33 = vpack.c.bf16 %v879_v32, %v878_v31  ;;  %v1291_v32 = vld [vmem:[%s2541_s3 + $0x5] ss:$0 sm:$0xff] }
 0x18b   :  { %2056 = vmatpush3.bf16.msra.mxu0 %v2055_v35  ;;  %v881_v35 = vld [vmem:[#allocation4 + $0x218] sm:$0xff] }
 0x18c   :  { %2057 = vmatprep.subr.bf16.mxu0 %v2287_v51  ;;  %v2088_v36 = vpack.c.bf16 %v881_v35, %v880_v34 }
 0x18f   :  { %2059 = vmatpush3.bf16.msra.mxu0 %v2058_v38  ;;  %v883_v38 = vld [vmem:[#allocation4 + $0x228] sm:$0xff] }
 0x190   :  { %2084 = vmatprep.subr.bf16.mxu0 %v2287_v51 }
 0x245   :  { %v553_v0 = vpop.f32.mrb[4].mxu0 }
 0x246   :  { %v554_v2 = vadd.f32 %v1287_v63, %v553_v0  ;;  %v1622_v3 = vpop.f32.mrb[5].mxu0  ;;  %v2067_v63 = vpack.c.bf16 %v780_v62, %v779_v61  ;;  %v781_v0 = vld [vmem:[#allocation4 + $0x1b0] sm:$0xff] }
 0x248   :  { %v558_v4 = vand.u32 2147483647, %v554_v2  ;;  %v557_v10 = vmax.f32 %v554_v2, 0.0 }
 0x24a   :  { %v559_v5 = vsub.f32 0.0, %v558_v4  ;;  %v783_v4 = vld [vmem:[#allocation4 + $0x1c0] sm:$0xff] }
 0x24c   :  { %v560_v6 = vmul.f32 1.442695, %v559_v5  ;;  %v784_v5 = vld [vmem:[#allocation4 + $0x1c8] sm:$0xff] }
 0x24e   :  { %2193 = vpow2.f32 %v560_v6  ;;  %v2073_v6 = vpack.c.bf16 %v784_v5, %v783_v4 }
 0x258   :  { %v2194_v7 = vpop.eup %2193 }
 0x259   :  { %v562_v8 = vadd.f32 1.0, %v2194_v7  ;;  %v785_v7 = vld [vmem:[#allocation4 + $0x1d0] sm:$0xff] }
 0x25b   :  { %2195 = vlog2.f32 %v562_v8  ;;  %v786_v8 = vld [vmem:[#allocation4 + $0x1d8] sm:$0xff] }
 0x265   :  { %v2196_v9 = vpop.eup %2195 }
 0x266   :  { %v564_v11 = vmul.f32 0.6931472, %v2196_v9  ;;  %v2076_v9 = vpack.c.bf16 %v786_v8, %v785_v7  ;;  %v981_v8 = vld [vmem:[#allocation4 + $0x280] sm:$0xff] }
 0x268   :  { %v565_v12 = vadd.f32 %v564_v11, %v557_v10  ;;  %v787_v10 = vld [vmem:[#allocation4 + $0x1e0] sm:$0xff]  ;;  %v788_v11 = vld [vmem:[#allocation4 + $0x1e8] sm:$0xff] }
 0x26a   :  { %2197 = vtanh.f32 %v565_v12  ;;  %v2079_v12 = vpack.c.bf16 %v788_v11, %v787_v10  ;;  %v983_v11 = vld [vmem:[#allocation4 + $0x290] sm:$0xff] }
 0x274   :  { %v2198_v13 = vpop.eup %2197 }
 0x275   :  { %v567_v14 = vmul.f32 %v2198_v13, %v554_v2  ;;  %v782_v2 = vld [vmem:[#allocation4 + $0x1b8] sm:$0xff]  ;;  %v789_v13 = vld [vmem:[#allocation4 + $0x1f0] sm:$0xff] }
 0x276   :  { %v2070_v3 = vpack.c.bf16 %v782_v2, %v781_v0 }
 0x277   :  { %1656 = vmatmul.mubr.f32.vlgmr.msra.gmra.mrb[4].mxu1 %v567_v14  ;;  %v790_v14 = vld [vmem:[#allocation4 + $0x1f8] sm:$0xff] }
 0x278   :  { %1725 = vmatprep.mubr.msk.f32.mxu1 %vm2288_vm0, %v2289_v1  ;;  %2062 = vmatpush3.bf16.msra.mxu1 %v2061_v57  ;;  %v2082_v15 = vpack.c.bf16 %v790_v14, %v789_v13  ;;  %v985_v14 = vld [vmem:[#allocation4 + $0x2a0] sm:$0xff] }
 0x279   :  { %2063 = vmatprep.subr.bf16.mxu1 %v2287_v51 }
 0x27c   :  { %2065 = vmatpush3.bf16.msra.mxu1 %v2064_v60 }
 0x27d   :  { %2066 = vmatprep.subr.bf16.mxu1 %v2287_v51 }
 0x280   :  { %2068 = vmatpush3.bf16.msra.mxu1 %v2067_v63 }
 0x281   :  { %2069 = vmatprep.subr.bf16.mxu1 %v2287_v51 }
 0x284   :  { %2071 = vmatpush3.bf16.msra.mxu1 %v2070_v3 }
 0x285   :  { %2072 = vmatprep.subr.bf16.mxu1 %v2287_v51 }
 0x288   :  { %2074 = vmatpush3.bf16.msra.mxu1 %v2073_v6 }
 0x289   :  { %2075 = vmatprep.subr.bf16.mxu1 %v2287_v51 }
 0x28c   :  { %2077 = vmatpush3.bf16.msra.mxu1 %v2076_v9  ;;  %v982_v9 = vld [vmem:[#allocation4 + $0x288] sm:$0xff] }
 0x28d   :  { %2078 = vmatprep.subr.bf16.mxu1 %v2287_v51  ;;  %v2109_v10 = vpack.c.bf16 %v982_v9, %v981_v8  ;;  %v1292_v8 = vld [vmem:[%s2541_s3 + $0x6] ss:$0 sm:$0xff] }
 0x290   :  { %2080 = vmatpush3.bf16.msra.mxu1 %v2079_v12  ;;  %v984_v12 = vld [vmem:[#allocation4 + $0x298] sm:$0xff] }
 0x291   :  { %2081 = vmatprep.subr.bf16.mxu1 %v2287_v51  ;;  %v2112_v13 = vpack.c.bf16 %v984_v12, %v983_v11 }
 0x294   :  { %2083 = vmatpush3.bf16.msra.mxu1 %v2082_v15  ;;  %v986_v15 = vld [vmem:[#allocation4 + $0x2a8] sm:$0xff] }
 0x295   :  { %2108 = vmatprep.subr.bf16.mxu1 %v2287_v51 }
 0x34a   :  { %v656_v40 = vpop.f32.mrb[4].mxu1 }
 0x34b   :  { %v657_v41 = vadd.f32 %v1288_v39, %v656_v40  ;;  %v1657_v42 = vpop.f32.mrb[5].mxu1  ;;  %v2091_v39 = vpack.c.bf16 %v883_v38, %v882_v37  ;;  %v884_v40 = vld [vmem:[#allocation4 + $0x230] sm:$0xff] }
 0x34d   :  { %v661_v43 = vand.u32 2147483647, %v657_v41  ;;  %v660_v49 = vmax.f32 %v657_v41, 0.0 }
 0x34f   :  { %v662_v44 = vsub.f32 0.0, %v661_v43  ;;  %v886_v43 = vld [vmem:[#allocation4 + $0x240] sm:$0xff] }
 0x351   :  { %v663_v45 = vmul.f32 1.442695, %v662_v44  ;;  %v887_v44 = vld [vmem:[#allocation4 + $0x248] sm:$0xff] }
 0x353   :  { %2199 = vpow2.f32 %v663_v45  ;;  %v2097_v45 = vpack.c.bf16 %v887_v44, %v886_v43 }
 0x35d   :  { %v2200_v46 = vpop.eup %2199 }
 0x35e   :  { %v665_v47 = vadd.f32 1.0, %v2200_v46  ;;  %v888_v46 = vld [vmem:[#allocation4 + $0x250] sm:$0xff] }
 0x360   :  { %2201 = vlog2.f32 %v665_v47  ;;  %v889_v47 = vld [vmem:[#allocation4 + $0x258] sm:$0xff] }
 0x36a   :  { %v2202_v48 = vpop.eup %2201 }
 0x36b   :  { %v667_v50 = vmul.f32 0.6931472, %v2202_v48  ;;  %v2100_v48 = vpack.c.bf16 %v889_v47, %v888_v46  ;;  %v1084_v47 = vld [vmem:[#allocation4 + $0x300] sm:$0xff] }
 0x36d   :  { %v668_v52 = vadd.f32 %v667_v50, %v660_v49  ;;  %v890_v49 = vld [vmem:[#allocation4 + $0x260] sm:$0xff]  ;;  %v891_v50 = vld [vmem:[#allocation4 + $0x268] sm:$0xff] }
 0x36f   :  { %2203 = vtanh.f32 %v668_v52  ;;  %v2103_v52 = vpack.c.bf16 %v891_v50, %v890_v49  ;;  %v1086_v50 = vld [vmem:[#allocation4 + $0x310] sm:$0xff] }
 0x379   :  { %v2204_v53 = vpop.eup %2203 }
 0x37a   :  { %v670_v54 = vmul.f32 %v2204_v53, %v657_v41  ;;  %v885_v41 = vld [vmem:[#allocation4 + $0x238] sm:$0xff]  ;;  %v892_v53 = vld [vmem:[#allocation4 + $0x270] sm:$0xff] }
 0x37b   :  { %v2094_v42 = vpack.c.bf16 %v885_v41, %v884_v40 }
 0x37c   :  { %1691 = vmatmul.mubr.f32.vlgmr.msra.gmra.mrb[6].mxu0 %v670_v54  ;;  %v893_v54 = vld [vmem:[#allocation4 + $0x278] sm:$0xff] }
 0x37d   :  { %1760 = vmatprep.mubr.msk.f32.mxu0 %vm2288_vm0, %v2289_v1  ;;  %2086 = vmatpush3.bf16.msra.mxu0 %v2085_v33  ;;  %v2106_v55 = vpack.c.bf16 %v893_v54, %v892_v53  ;;  %v1088_v54 = vld [vmem:[#allocation4 + $0x320] sm:$0xff] }
 0x37e   :  { %2087 = vmatprep.subr.bf16.mxu0 %v2287_v51 }
 0x381   :  { %2089 = vmatpush3.bf16.msra.mxu0 %v2088_v36 }
 0x382   :  { %2090 = vmatprep.subr.bf16.mxu0 %v2287_v51 }
 0x385   :  { %2092 = vmatpush3.bf16.msra.mxu0 %v2091_v39 }
 0x386   :  { %2093 = vmatprep.subr.bf16.mxu0 %v2287_v51 }
 0x389   :  { %2095 = vmatpush3.bf16.msra.mxu0 %v2094_v42 }
 0x38a   :  { %2096 = vmatprep.subr.bf16.mxu0 %v2287_v51 }
 0x38d   :  { %2098 = vmatpush3.bf16.msra.mxu0 %v2097_v45 }
 0x38e   :  { %2099 = vmatprep.subr.bf16.mxu0 %v2287_v51 }
 0x391   :  { %2101 = vmatpush3.bf16.msra.mxu0 %v2100_v48  ;;  %v1085_v48 = vld [vmem:[#allocation4 + $0x308] sm:$0xff] }
 0x392   :  { %2102 = vmatprep.subr.bf16.mxu0 %v2287_v51  ;;  %v2133_v49 = vpack.c.bf16 %v1085_v48, %v1084_v47  ;;  %v1293_v47 = vld [vmem:[%s2541_s3 + $0x7] ss:$0 sm:$0xff] }
 0x395   :  { %2104 = vmatpush3.bf16.msra.mxu0 %v2103_v52  ;;  %v1087_v52 = vld [vmem:[#allocation4 + $0x318] sm:$0xff] }
 0x396   :  { %2105 = vmatprep.subr.bf16.mxu0 %v2287_v51  ;;  %v2136_v53 = vpack.c.bf16 %v1087_v52, %v1086_v50 }
 0x399   :  { %2107 = vmatpush3.bf16.msra.mxu0 %v2106_v55  ;;  %v1089_v55 = vld [vmem:[#allocation4 + $0x328] sm:$0xff] }
 0x39a   :  { %2132 = vmatprep.subr.bf16.mxu0 %v2287_v51 }
 0x44f   :  { %v759_v17 = vpop.f32.mrb[6].mxu0 }
 0x450   :  { %v760_v18 = vadd.f32 %v1289_v16, %v759_v17  ;;  %v1692_v19 = vpop.f32.mrb[7].mxu0  ;;  %v2115_v16 = vpack.c.bf16 %v986_v15, %v985_v14  ;;  %v987_v17 = vld [vmem:[#allocation4 + $0x2b0] sm:$0xff] }
 0x452   :  { %v764_v20 = vand.u32 2147483647, %v760_v18  ;;  %v763_v26 = vmax.f32 %v760_v18, 0.0 }
 0x454   :  { %v765_v21 = vsub.f32 0.0, %v764_v20  ;;  %v989_v20 = vld [vmem:[#allocation4 + $0x2c0] sm:$0xff] }
 0x456   :  { %v766_v22 = vmul.f32 1.442695, %v765_v21  ;;  %v990_v21 = vld [vmem:[#allocation4 + $0x2c8] sm:$0xff] }
 0x458   :  { %2205 = vpow2.f32 %v766_v22  ;;  %v2121_v22 = vpack.c.bf16 %v990_v21, %v989_v20 }
 0x462   :  { %v2206_v23 = vpop.eup %2205 }
 0x463   :  { %v768_v24 = vadd.f32 1.0, %v2206_v23  ;;  %v991_v23 = vld [vmem:[#allocation4 + $0x2d0] sm:$0xff] }
 0x465   :  { %2207 = vlog2.f32 %v768_v24  ;;  %v992_v24 = vld [vmem:[#allocation4 + $0x2d8] sm:$0xff] }
 0x46f   :  { %v2208_v25 = vpop.eup %2207 }
 0x470   :  { %v770_v27 = vmul.f32 0.6931472, %v2208_v25  ;;  %v2124_v25 = vpack.c.bf16 %v992_v24, %v991_v23  ;;  %v1186_v23 = vld [vmem:[%s2542_s4] sm:$0xff]  ;;  %v1187_v24 = vld [vmem:[%s2542_s4 + $0x8] sm:$0xff] }
 0x472   :  { %v771_v28 = vadd.f32 %v770_v27, %v763_v26  ;;  %v993_v26 = vld [vmem:[#allocation4 + $0x2e0] sm:$0xff]  ;;  %v994_v27 = vld [vmem:[#allocation4 + $0x2e8] sm:$0xff] }
 0x474   :  { %2209 = vtanh.f32 %v771_v28  ;;  %v2127_v28 = vpack.c.bf16 %v994_v27, %v993_v26  ;;  %v1188_v26 = vld [vmem:[%s2542_s4 + $0x10] sm:$0xff]  ;;  %v1189_v27 = vld [vmem:[%s2542_s4 + $0x18] sm:$0xff] }
 0x47e   :  { %v2210_v29 = vpop.eup %2209 }
 0x47f   :  { %v773_v30 = vmul.f32 %v2210_v29, %v760_v18  ;;  %v988_v18 = vld [vmem:[#allocation4 + $0x2b8] sm:$0xff]  ;;  %v995_v29 = vld [vmem:[#allocation4 + $0x2f0] sm:$0xff] }
 0x480   :  { %v2118_v19 = vpack.c.bf16 %v988_v18, %v987_v17 }
 0x481   :  { %1726 = vmatmul.mubr.f32.vlgmr.msra.gmra.mrb[6].mxu1 %v773_v30  ;;  %v996_v30 = vld [vmem:[#allocation4 + $0x2f8] sm:$0xff] }
 0x482   :  { %1795 = vmatprep.mubr.msk.f32.mxu1 %vm2288_vm0, %v2289_v1  ;;  %2110 = vmatpush3.bf16.msra.mxu1 %v2109_v10  ;;  %v2130_v31 = vpack.c.bf16 %v996_v30, %v995_v29  ;;  %v1190_v29 = vld [vmem:[%s2542_s4 + $0x20] sm:$0xff]  ;;  %v1191_v30 = vld [vmem:[%s2542_s4 + $0x28] sm:$0xff] }
 0x483   :  { %2111 = vmatprep.subr.bf16.mxu1 %v2287_v51 }
 0x486   :  { %2113 = vmatpush3.bf16.msra.mxu1 %v2112_v13 }
 0x487   :  { %2114 = vmatprep.subr.bf16.mxu1 %v2287_v51 }
 0x48a   :  { %2116 = vmatpush3.bf16.msra.mxu1 %v2115_v16 }
 0x48b   :  { %2117 = vmatprep.subr.bf16.mxu1 %v2287_v51 }
 0x48e   :  { %2119 = vmatpush3.bf16.msra.mxu1 %v2118_v19 }
 0x48f   :  { %2120 = vmatprep.subr.bf16.mxu1 %v2287_v51 }
 0x492   :  { %2122 = vmatpush3.bf16.msra.mxu1 %v2121_v22 }
 0x493   :  { %2123 = vmatprep.subr.bf16.mxu1 %v2287_v51 }
 0x496   :  { %2125 = vmatpush3.bf16.msra.mxu1 %v2124_v25  ;;  %v2157_v25 = vpack.c.bf16 %v1187_v24, %v1186_v23 }
 0x497   :  { %2126 = vmatprep.subr.bf16.mxu1 %v2287_v51 }
 0x49a   :  { %2128 = vmatpush3.bf16.msra.mxu1 %v2127_v28  ;;  %v2160_v28 = vpack.c.bf16 %v1189_v27, %v1188_v26 }
 0x49b   :  { %2129 = vmatprep.subr.bf16.mxu1 %v2287_v51 }
 0x49e   :  { %2131 = vmatpush3.bf16.msra.mxu1 %v2130_v31  ;;  %v2163_v31 = vpack.c.bf16 %v1191_v30, %v1190_v29 }
 0x49f   :  { %2156 = vmatprep.subr.bf16.mxu1 %v2287_v51 }
 0x554   :  { %v862_v57 = vpop.f32.mrb[6].mxu1 }
 0x555   :  { %v863_v58 = vadd.f32 %v1290_v56, %v862_v57  ;;  %v1727_v59 = vpop.f32.mrb[7].mxu1  ;;  %v2139_v56 = vpack.c.bf16 %v1089_v55, %v1088_v54  ;;  %v1090_v57 = vld [vmem:[#allocation4 + $0x330] sm:$0xff] }
 0x556   :  { %v1092_v59 = vld [vmem:[#allocation4 + $0x340] sm:$0xff] }
 0x557   :  { %v867_v60 = vand.u32 2147483647, %v863_v58  ;;  %v866_v3 = vmax.f32 %v863_v58, 0.0 }
 0x559   :  { %v868_v61 = vsub.f32 0.0, %v867_v60  ;;  %v1093_v60 = vld [vmem:[#allocation4 + $0x348] sm:$0xff] }
 0x55b   :  { %v869_v62 = vmul.f32 1.442695, %v868_v61  ;;  %v2145_v61 = vpack.c.bf16 %v1093_v60, %v1092_v59 }
 0x55d   :  { %2211 = vpow2.f32 %v869_v62  ;;  %v1094_v62 = vld [vmem:[#allocation4 + $0x350] sm:$0xff] }
 0x567   :  { %v2212_v63 = vpop.eup %2211 }
 0x568   :  { %v871_v0 = vadd.f32 1.0, %v2212_v63  ;;  %v1095_v63 = vld [vmem:[#allocation4 + $0x358] sm:$0xff] }
 0x56a   :  { %2213 = vlog2.f32 %v871_v0  ;;  %v2148_v0 = vpack.c.bf16 %v1095_v63, %v1094_v62 }
 0x574   :  { %v2214_v2 = vpop.eup %2213 }
 0x575   :  { %v873_v4 = vmul.f32 0.6931472, %v2214_v2  ;;  %v1096_v2 = vld [vmem:[#allocation4 + $0x360] sm:$0xff] }
 0x577   :  { %v874_v5 = vadd.f32 %v873_v4, %v866_v3  ;;  %v1097_v3 = vld [vmem:[#allocation4 + $0x368] sm:$0xff] }
 0x578   :  { %v2151_v4 = vpack.c.bf16 %v1097_v3, %v1096_v2 }
 0x579   :  { %2215 = vtanh.f32 %v874_v5  ;;  %v1098_v5 = vld [vmem:[#allocation4 + $0x370] sm:$0xff] }
 0x583   :  { %v2216_v6 = vpop.eup %2215 }
 0x584   :  { %v876_v7 = vmul.f32 %v2216_v6, %v863_v58  ;;  %v1099_v6 = vld [vmem:[#allocation4 + $0x378] sm:$0xff] }
 0x586   :  { %1761 = vmatmul.mubr.f32.vlgmr.msra.gmra.mrb[8].mxu0 %v876_v7  ;;  %v2154_v7 = vpack.c.bf16 %v1099_v6, %v1098_v5 }
 0x587   :  { %1830 = vmatprep.mubr.msk.f32.mxu0 %vm2288_vm0, %v2289_v1  ;;  %2134 = vmatpush3.bf16.msra.mxu0 %v2133_v49 }
 0x588   :  { %2135 = vmatprep.subr.bf16.mxu0 %v2287_v51 }
 0x58b   :  { %2137 = vmatpush3.bf16.msra.mxu0 %v2136_v53 }
 0x58c   :  { %2138 = vmatprep.subr.bf16.mxu0 %v2287_v51 }
 0x58f   :  { %2140 = vmatpush3.bf16.msra.mxu0 %v2139_v56 }
 0x590   :  { %2141 = vmatprep.subr.bf16.mxu0 %v2287_v51 }
 0x659   :  { %v965_v33 = vpop.f32.mrb[8].mxu0 }
 0x65a   :  { %v966_v34 = vadd.f32 %v1291_v32, %v965_v33  ;;  %v1762_v35 = vpop.f32.mrb[9].mxu0  ;;  %v1192_v32 = vld [vmem:[%s2542_s4 + $0x30] sm:$0xff]  ;;  %v1193_v33 = vld [vmem:[%s2542_s4 + $0x38] sm:$0xff] }
 0x65b   :  { %v1194_v35 = vld [vmem:[%s2542_s4 + $0x40] sm:$0xff] }
 0x65c   :  { %v970_v36 = vand.u32 2147483647, %v966_v34  ;;  %v969_v42 = vmax.f32 %v966_v34, 0.0 }
 0x65e   :  { %v971_v37 = vsub.f32 0.0, %v970_v36  ;;  %v1195_v36 = vld [vmem:[%s2542_s4 + $0x48] sm:$0xff] }
 0x660   :  { %v972_v38 = vmul.f32 1.442695, %v971_v37  ;;  %v2169_v37 = vpack.c.bf16 %v1195_v36, %v1194_v35 }
 0x662   :  { %2217 = vpow2.f32 %v972_v38  ;;  %v1196_v38 = vld [vmem:[%s2542_s4 + $0x50] sm:$0xff] }
 0x66c   :  { %v2218_v39 = vpop.eup %2217 }
 0x66d   :  { %v974_v40 = vadd.f32 1.0, %v2218_v39  ;;  %v1197_v39 = vld [vmem:[%s2542_s4 + $0x58] sm:$0xff] }
 0x66f   :  { %2219 = vlog2.f32 %v974_v40  ;;  %v2172_v40 = vpack.c.bf16 %v1197_v39, %v1196_v38 }
 0x679   :  { %v2220_v41 = vpop.eup %2219 }
 0x67a   :  { %v976_v43 = vmul.f32 0.6931472, %v2220_v41  ;;  %v1198_v41 = vld [vmem:[%s2542_s4 + $0x60] sm:$0xff] }
 0x67c   :  { %v977_v44 = vadd.f32 %v976_v43, %v969_v42  ;;  %v1199_v42 = vld [vmem:[%s2542_s4 + $0x68] sm:$0xff] }
 0x67d   :  { %v2175_v43 = vpack.c.bf16 %v1199_v42, %v1198_v41 }
 0x67e   :  { %2221 = vtanh.f32 %v977_v44  ;;  %v1200_v44 = vld [vmem:[%s2542_s4 + $0x70] sm:$0xff] }
 0x688   :  { %v2222_v45 = vpop.eup %2221 }
 0x689   :  { %v979_v46 = vmul.f32 %v2222_v45, %v966_v34  ;;  %v2166_v34 = vpack.c.bf16 %v1193_v33, %v1192_v32  ;;  %v1201_v45 = vld [vmem:[%s2542_s4 + $0x78] sm:$0xff] }
 0x68b   :  { %1796 = vmatmul.mubr.f32.vlgmr.msra.gmra.mrb[8].mxu1 %v979_v46  ;;  %v2178_v46 = vpack.c.bf16 %v1201_v45, %v1200_v44 }
 0x68c   :  { %1865 = vmatprep.mubr.msk.f32.mxu1 %vm2288_vm0, %v2289_v1  ;;  %v1091_v1 = vld [vmem:[#allocation4 + $0x338] sm:$0xff]  ;;  %2158 = vmatpush3.bf16.msra.mxu1 %v2157_v25 }
 0x68d   :  { %v2142_v58 = vpack.c.bf16 %v1091_v1, %v1090_v57  ;;  %2159 = vmatprep.subr.bf16.mxu1 %v2287_v51 }
 0x68f   :  { %2143 = vmatpush3.bf16.msra.mxu0 %v2142_v58 }
 0x690   :  { %2144 = vmatprep.subr.bf16.mxu0 %v2287_v51  ;;  %2161 = vmatpush3.bf16.msra.mxu1 %v2160_v28 }
 0x691   :  { %2162 = vmatprep.subr.bf16.mxu1 %v2287_v51 }
 0x693   :  { %2146 = vmatpush3.bf16.msra.mxu0 %v2145_v61  ;;  %v1294_v61 = vld [vmem:[%s2543_s5] ss:$0 sm:$0xff] }
 0x694   :  { %2147 = vmatprep.subr.bf16.mxu0 %v2287_v51  ;;  %2164 = vmatpush3.bf16.msra.mxu1 %v2163_v31 }
 0x695   :  { %2165 = vmatprep.subr.bf16.mxu1 %v2287_v51 }
 0x697   :  { %2149 = vmatpush3.bf16.msra.mxu0 %v2148_v0 }
 0x698   :  { %2150 = vmatprep.subr.bf16.mxu0 %v2287_v51  ;;  %2167 = vmatpush3.bf16.msra.mxu1 %v2166_v34 }
 0x699   :  { %2168 = vmatprep.subr.bf16.mxu1 %v2287_v51 }
 0x69b   :  { %2152 = vmatpush3.bf16.msra.mxu0 %v2151_v4 }
 0x69c   :  { %2153 = vmatprep.subr.bf16.mxu0 %v2287_v51  ;;  %2170 = vmatpush3.bf16.msra.mxu1 %v2169_v37 }
 0x69d   :  { %2171 = vmatprep.subr.bf16.mxu1 %v2287_v51 }
 0x69f   :  { %2155 = vmatpush3.bf16.msra.mxu0 %v2154_v7 }
 0x6a0   :  { %2173 = vmatpush3.bf16.msra.mxu1 %v2172_v40 }
 0x6a1   :  { %2174 = vmatprep.subr.bf16.mxu1 %v2287_v51 }
 0x6a4   :  { %2176 = vmatpush3.bf16.msra.mxu1 %v2175_v43 }
 0x6a5   :  { %2177 = vmatprep.subr.bf16.mxu1 %v2287_v51 }
 0x6a8   :  { %2179 = vmatpush3.bf16.msra.mxu1 %v2178_v46 }
 0x75e   :  { %v1068_v9 = vpop.f32.mrb[8].mxu1 }
 0x75f   :  { %v1069_v10 = vadd.f32 %v1292_v8, %v1068_v9  ;;  %v1797_v11 = vpop.f32.mrb[9].mxu1 }
 0x761   :  { %v1073_v12 = vand.u32 2147483647, %v1069_v10  ;;  %v1072_v18 = vmax.f32 %v1069_v10, 0.0 }
 0x763   :  { %v1074_v13 = vsub.f32 0.0, %v1073_v12 }
 0x765   :  { %v1075_v14 = vmul.f32 1.442695, %v1074_v13 }
 0x767   :  { %2223 = vpow2.f32 %v1075_v14 }
 0x771   :  { %v2224_v15 = vpop.eup %2223 }
 0x772   :  { %v1077_v16 = vadd.f32 1.0, %v2224_v15 }
 0x774   :  { %2225 = vlog2.f32 %v1077_v16 }
 0x77e   :  { %v2226_v17 = vpop.eup %2225 }
 0x77f   :  { %v1079_v19 = vmul.f32 0.6931472, %v2226_v17 }
 0x781   :  { %v1080_v20 = vadd.f32 %v1079_v19, %v1072_v18 }
 0x783   :  { %2227 = vtanh.f32 %v1080_v20 }
 0x78d   :  { %v2228_v21 = vpop.eup %2227 }
 0x78e   :  { %v1082_v22 = vmul.f32 %v2228_v21, %v1069_v10 }
 0x790   :  { %1831 = vmatmul.mubr.f32.vlgmr.msra.gmra.mrb[10].mxu0 %v1082_v22 }
 0x863   :  { %v1171_v48 = vpop.f32.mrb[10].mxu0 }
 0x864   :  { %v1172_v49 = vadd.f32 %v1293_v47, %v1171_v48  ;;  %v1832_v50 = vpop.f32.mrb[11].mxu0 }
 0x866   :  { %v1176_v52 = vand.u32 2147483647, %v1172_v49  ;;  %v1175_v57 = vmax.f32 %v1172_v49, 0.0 }
 0x868   :  { %v1177_v53 = vsub.f32 0.0, %v1176_v52 }
 0x86a   :  { %v1178_v51 = vmul.f32 1.442695, %v1177_v53 }
 0x86c   :  { %2229 = vpow2.f32 %v1178_v51 }
 0x876   :  { %v2230_v54 = vpop.eup %2229 }
 0x877   :  { %v1180_v55 = vadd.f32 1.0, %v2230_v54 }
 0x879   :  { %2231 = vlog2.f32 %v1180_v55 }
 0x883   :  { %v2232_v56 = vpop.eup %2231 }
 0x884   :  { %v1182_v1 = vmul.f32 0.6931472, %v2232_v56 }
 0x886   :  { %v1183_v58 = vadd.f32 %v1182_v1, %v1175_v57 }
 0x888   :  { %2233 = vtanh.f32 %v1183_v58 }
 0x892   :  { %v2234_v59 = vpop.eup %2233 }
 0x893   :  { %v1185_v60 = vmul.f32 %v2234_v59, %v1172_v49 }
 0x895   :  { %1866 = vmatmul.mubr.f32.vlgmr.msra.gmra.mrb[10].mxu1 %v1185_v60 }
 0x968   :  { %v1275_v62 = vpop.f32.mrb[10].mxu1 }
 0x969   :  { %v1276_v63 = vadd.f32 %v1294_v61, %v1275_v62  ;;  %v1867_v0 = vpop.f32.mrb[11].mxu1 }
 0x96b   :  { %1279 = vst [vmem:[%s2544_s6] sm:$0xff] %v1276_v63 }
 0x96c   :  { %1284 = vsyncpa [#allocation3], 1 }
 0x96d   :  { %1285 = vsyncpa [#allocation5], 1 }

</bundles_post_ra>
